<compile_context>
chip_gen: v7x
topology: tpu7x:2x2x1
jax: 0.10.0
libtpu: 0.0.40
codegen_flags: <defaults>
</compile_context>

<pallas_src>
import functools

import jax
import jax.numpy as jnp
from jax.experimental import pallas as pl
from jax.experimental.pallas import tpu as pltpu


_KPARAM_ORDER = ("ln1_w", "ln1_b", "wqkv", "bqkv", "wo", "bo",
                 "ln2_w", "ln2_b", "wfc", "bfc", "wpr", "bpr")
_BIG_WEIGHTS = frozenset({"wqkv", "wo", "wfc", "wpr"})


# ---------------------------------------------------------------------------
# Kernel
# ---------------------------------------------------------------------------
def _layernorm_f32(v, w, b, eps=1e-5):
    # Matches torch LayerNorm computed in fp32 (the LayerNorm subclass casts).
    mu = jnp.mean(v, axis=-1, keepdims=True)
    var = jnp.mean((v - mu) ** 2, axis=-1, keepdims=True)
    return (v - mu) * jax.lax.rsqrt(var + eps) * w + b


def resblock_stack_kernel(x_ref, mask_ref,
                          ln1w_ref, ln1b_ref, wqkv_ref, bqkv_ref, wo_ref, bo_ref,
                          ln2w_ref, ln2b_ref, wfc_ref, bfc_ref, wpr_ref, bpr_ref,
                          o_ref, attn_sc, carry_ref, *, n_head, use_mask):
    bt, L, D = x_ref.shape
    M = bt * L
    Dh = D // n_head
    layer = pl.program_id(1)

    # Load the residual stream into the cross-layer VMEM carry on layer 0 only.
    @pl.when(layer == 0)
    def _():
        carry_ref[...] = x_ref[...].astype(jnp.float32)

    x = carry_ref[...].reshape(M, D)                     # residual stream (f32)

    # ---- attention branch: x + Wo @ MHA(ln_1(x)) ----
    h = _layernorm_f32(x, ln1w_ref[0, 0], ln1b_ref[0, 0])
    # Fused QKV projection: one wide MXU matmul (M, D) @ (D, 3D), bf16 operands,
    # f32 accumulation.  1/sqrt(Dh) already folded into Wq / bq host-side.
    qkv = jnp.dot(h.astype(jnp.bfloat16), wqkv_ref[0],
                  preferred_element_type=jnp.float32) + bqkv_ref[0, 0]
    qkv = qkv.reshape(bt, L, 3 * D).astype(jnp.bfloat16)
    q = qkv[:, :, :D]
    k = qkv[:, :, D:2 * D]
    v = qkv[:, :, 2 * D:]

    # Static head loop (n_head small); each head's output goes straight into the
    # bf16 VMEM scratch slab, so no (M, D) accumulator stays live across heads
    # and the output projection is a single K=D matmul afterwards.
    for hd in range(n_head):
        lo = hd * Dh
        qh = q[:, :, lo:lo + Dh]                                        # (bt, L, Dh)
        kh = k[:, :, lo:lo + Dh]
        vh = v[:, :, lo:lo + Dh]
        s = jnp.einsum("bld,bmd->blm", qh, kh,
                       preferred_element_type=jnp.float32)              # (bt, L, L)
        if use_mask:
            s = s + mask_ref[...]                                       # additive mask
        s = s - jnp.max(s, axis=-1, keepdims=True)
        p = jnp.exp(s)
        p = p * pl.reciprocal(jnp.sum(p, axis=-1, keepdims=True), approx=True)
        oh = jnp.einsum("blm,bmd->bld", p.astype(jnp.bfloat16), vh,
                        preferred_element_type=jnp.float32)             # (bt, L, Dh)
        attn_sc[:, :, pl.ds(lo, Dh)] = oh.astype(attn_sc.dtype)         # bf16 store

    attn = attn_sc[...].reshape(M, D)                                   # bf16
    x = x + jnp.dot(attn, wo_ref[0],
                    preferred_element_type=jnp.float32) + bo_ref[0, 0]

    # ---- MLP branch: x + c_proj(QuickGELU(c_fc(ln_2(x)))) ----
    h2 = _layernorm_f32(x, ln2w_ref[0, 0], ln2b_ref[0, 0])
    fc = jnp.dot(h2.astype(jnp.bfloat16), wfc_ref[0],
                 preferred_element_type=jnp.float32) + bfc_ref[0, 0]    # (M, 4D)
    fc = fc * jax.nn.sigmoid(1.702 * fc)                                # QuickGELU (f32)
    pr = jnp.dot(fc.astype(jnp.bfloat16), wpr_ref[0],
                 preferred_element_type=jnp.float32) + bpr_ref[0, 0]
    xn = (x + pr).reshape(bt, L, D)

    carry_ref[...] = xn                                  # carry to next layer (f32)

    @pl.when(layer == pl.num_programs(1) - 1)
    def _():
        o_ref[...] = xn.astype(o_ref.dtype)              # single HBM writeback


# ---------------------------------------------------------------------------
# VMEM budgeting & tiling
# ---------------------------------------------------------------------------
def _vmem_budget_bytes():
    """~0.85x of per-core VMEM capacity (64 MiB on v7x, 128 MiB on v5e/v6e)."""
    try:
        cap = int(pltpu.get_tpu_info().vmem_capacity_bytes)
    except Exception:  # pragma: no cover - conservative fallback
        cap = 64 << 20
    return int(min(int(0.85 * cap), 110 << 20))


def _estimate_vmem_bytes(bt, L, D, per_layer_weight_bytes, wbuf, mask_bytes):
    io = 2 * 2 * bt * L * D * 4                    # x in + o out blocks, double-buffered f32
    scratch = bt * L * D * (2 + 4)                 # bf16 attn_sc + f32 carry
    act = bt * L * (28 * D + 8 * L)                # f32 working set (h/qkv/fc/scores)
    return io + scratch + act + wbuf * per_layer_weight_bytes + 2 * mask_bytes + (4 << 20)


def _pick_tiling(B, L, D, per_layer_weight_bytes, mask_bytes, budget):
    """Pick (batch_tile, weight_buffer_count) so the footprint fits the budget;
    fill the MXU M dim (>=512 rows on 128-MiB parts, >=256 otherwise) while
    keeping >=2 grid steps on the parallel axis when possible (megacore)."""
    target_rows = 512 if budget >= (80 << 20) else 256
    divisors = [d for d in range(1, B + 1) if B % d == 0]

    def fits(d, wbuf):
        return _estimate_vmem_bytes(d, L, D, per_layer_weight_bytes, wbuf,
                                    mask_bytes) <= budget

    for wbuf in (2, 1):                            # prefer prefetchable (double-buffered) weights
        fitting = [d for d in divisors if fits(d, wbuf)]
        if not fitting:
            continue
        multi = [d for d in fitting if B // d >= 2] or fitting
        big = [d for d in multi if d * L >= target_rows]
        return (min(big) if big else max(multi)), wbuf
    return 1, 1                                    # let the compiler spill rather than fail


# ---------------------------------------------------------------------------
# Parameter packing (PyTorch-shaped f32 params -> stacked kernel layout)
# ---------------------------------------------------------------------------
def prepare_stacked_params(layer_params, n_head):
    """Stack per-layer params along a leading `layers` axis, fuse QKV, fold the
    attention scale into Wq/bq, store weights bf16 and biases/LN in f32."""
    D = layer_params[0]["wq"].shape[0]
    scale = 1.0 / float(D // n_head) ** 0.5

    def stack(fn, dtype):
        return jnp.stack([jnp.asarray(fn(p)) for p in layer_params], axis=0).astype(dtype)

    return {
        "ln1_w": stack(lambda p: p["ln1_w"], jnp.float32),                       # (Ly,1,D)
        "ln1_b": stack(lambda p: p["ln1_b"], jnp.float32),
        "wqkv": stack(lambda p: jnp.concatenate([p["wq"] * scale, p["wk"], p["wv"]],
                                                axis=1), jnp.bfloat16),          # (Ly,D,3D)
        "bqkv": stack(lambda p: jnp.concatenate([p["bq"] * scale, p["bk"], p["bv"]],
                                                axis=1), jnp.float32),           # (Ly,1,3D)
        "wo": stack(lambda p: p["wo"], jnp.bfloat16),                            # (Ly,D,D)
        "bo": stack(lambda p: p["bo"], jnp.float32),
        "ln2_w": stack(lambda p: p["ln2_w"], jnp.float32),
        "ln2_b": stack(lambda p: p["ln2_b"], jnp.float32),
        "wfc": stack(lambda p: p["wfc"], jnp.bfloat16),                          # (Ly,D,4D)
        "bfc": stack(lambda p: p["bfc"], jnp.float32),
        "wpr": stack(lambda p: p["wpr"], jnp.bfloat16),                          # (Ly,4D,D)
        "bpr": stack(lambda p: p["bpr"], jnp.float32),
    }


# ---------------------------------------------------------------------------
# Wrapper
# ---------------------------------------------------------------------------
def transformer_forward(x_lnd, stacked_params, n_head, attn_mask=None):
    """x_lnd: (L, N, D) as in the PyTorch module (seq-first). attn_mask: optional
    additive float (L, L) mask (e.g. CLIP causal mask)."""
    x = jnp.transpose(x_lnd, (1, 0, 2)).astype(jnp.float32)   # (N, L, D)
    B, L, D = x.shape
    layers = stacked_params["wqkv"].shape[0]
    assert D % n_head == 0

    use_mask = attn_mask is not None
    mask = (jnp.asarray(attn_mask, jnp.float32) if use_mask
            else jnp.zeros((L, L), jnp.float32))

    per_layer_w = sum(int(v.size) * v.dtype.itemsize
                      for v in stacked_params.values()) // layers
    budget = _vmem_budget_bytes()
    bt, wbuf = _pick_tiling(B, L, D, per_layer_w, mask.size * 4, budget)
    est = _estimate_vmem_bytes(bt, L, D, per_layer_w, wbuf, mask.size * 4)
    vmem_limit = int(min(budget, max(32 << 20, est + (8 << 20))))

    in_specs = [
        pl.BlockSpec((bt, L, D), lambda b, l: (b, 0, 0)),      # x: fetched once per b
        pl.BlockSpec((L, L), lambda b, l: (0, 0)),             # mask: resident
    ]
    args = [x, mask]
    for name in _KPARAM_ORDER:
        p = stacked_params[name]
        blk = (1,) + p.shape[1:]
        kwargs = {}
        if wbuf == 1 and name in _BIG_WEIGHTS:
            # VMEM-tight (v7x): single-buffer the big per-layer weights.
            kwargs["pipeline_mode"] = pl.Buffered(1)
        in_specs.append(pl.BlockSpec(blk, lambda b, l: (l, 0, 0), **kwargs))
        args.append(p)

    out = pl.pallas_call(
        functools.partial(resblock_stack_kernel, n_head=n_head, use_mask=use_mask),
        out_shape=jax.ShapeDtypeStruct((B, L, D), jnp.float32),
        grid_spec=pltpu.PrefetchScalarGridSpec(
            num_scalar_prefetch=0,
            grid=(B // bt, layers),
            in_specs=in_specs,
            out_specs=pl.BlockSpec((bt, L, D), lambda b, l: (b, 0, 0)),
            scratch_shapes=[pltpu.VMEM((bt, L, D), jnp.bfloat16),   # per-head attn slab
                            pltpu.VMEM((bt, L, D), jnp.float32)]),  # cross-layer residual
        compiler_params=pltpu.CompilerParams(
            dimension_semantics=("parallel", "arbitrary"),
            vmem_limit_bytes=vmem_limit),
    )(*args)
    return jnp.transpose(out, (1, 0, 2)).astype(x_lnd.dtype)


# ---------------------------------------------------------------------------
# Deterministic synthetic parameter init (mirrors nn.MultiheadAttention /
# Linear / LayerNorm shapes; weights pre-transposed to (D_in, D_out))
# ---------------------------------------------------------------------------
def init_transformer_params(key, width, layers):
    D = width
    params = []
    for _ in range(layers):
        keys = jax.random.split(key, 9)
        key = keys[0]
        std = 0.02
        p = {
            "ln1_w": jnp.ones((1, D), jnp.float32),
            "ln1_b": jnp.zeros((1, D), jnp.float32),
            "wq": std * jax.random.normal(keys[1], (D, D), jnp.float32),
            "wk": std * jax.random.normal(keys[2], (D, D), jnp.float32),
            "wv": std * jax.random.normal(keys[3], (D, D), jnp.float32),
            "bq": std * jax.random.normal(keys[4], (1, D), jnp.float32),
            "bk": jnp.zeros((1, D), jnp.float32),
            "bv": jnp.zeros((1, D), jnp.float32),
            "wo": std * jax.random.normal(keys[5], (D, D), jnp.float32),
            "bo": jnp.zeros((1, D), jnp.float32),
            "ln2_w": jnp.ones((1, D), jnp.float32),
            "ln2_b": jnp.zeros((1, D), jnp.float32),
            "wfc": std * jax.random.normal(keys[6], (D, 4 * D), jnp.float32),
            "bfc": std * jax.random.normal(keys[7], (1, 4 * D), jnp.float32),
            "wpr": std * jax.random.normal(keys[8], (4 * D, D), jnp.float32),
            "bpr": jnp.zeros((1, D), jnp.float32),
        }
        params.append(p)
    return params


# ---------------------------------------------------------------------------
# Pure-JAX f32 reference (correctness check)
# ---------------------------------------------------------------------------
def ref_block(x, p, n_head):
    def ln(v, w, b):
        mu = jnp.mean(v, -1, keepdims=True)
        var = jnp.mean((v - mu) ** 2, -1, keepdims=True)
        return (v - mu) * jax.lax.rsqrt(var + 1e-5) * w[0] + b[0]

    B, L, D = x.shape
    Dh = D // n_head
    h = ln(x, p["ln1_w"], p["ln1_b"])
    q = h @ p["wq"] + p["bq"][0]
    k = h @ p["wk"] + p["bk"][0]
    v = h @ p["wv"] + p["bv"][0]
    q = q.reshape(B, L, n_head, Dh).transpose(0, 2, 1, 3) / (Dh ** 0.5)
    k = k.reshape(B, L, n_head, Dh).transpose(0, 2, 1, 3)
    v = v.reshape(B, L, n_head, Dh).transpose(0, 2, 1, 3)
    s = jnp.einsum("bhld,bhmd->bhlm", q, k)
    pw = jax.nn.softmax(s, axis=-1)
    o = jnp.einsum("bhlm,bhmd->bhld", pw, v)
    o = o.transpose(0, 2, 1, 3).reshape(B, L, D)
    x = x + o @ p["wo"] + p["bo"][0]
    h2 = ln(x, p["ln2_w"], p["ln2_b"])
    fc = h2 @ p["wfc"] + p["bfc"][0]
    fc = fc * jax.nn.sigmoid(1.702 * fc)
    return x + fc @ p["wpr"] + p["bpr"][0]


def ref_transformer(x_lnd, layer_params, n_head):
    x = jnp.transpose(x_lnd, (1, 0, 2))
    for p in layer_params:
        x = ref_block(x, p, n_head)
    return jnp.transpose(x, (1, 0, 2))


# ---------------------------------------------------------------------------
if __name__ == "__main__":
    WIDTH, LAYERS, HEADS = 32, 2, 4
    SEQ, BATCH = 8, 2

    key = jax.random.PRNGKey(0)
    kx, kp = jax.random.split(key)
    x = jax.random.normal(kx, (SEQ, BATCH, WIDTH), jnp.float32)  # (L, N, D)
    raw_params = init_transformer_params(kp, WIDTH, LAYERS)
    stacked = prepare_stacked_params(raw_params, HEADS)

    out = transformer_forward(x, stacked, HEADS, attn_mask=None)
    out = jax.block_until_ready(out)

    ref = ref_transformer(x, raw_params, HEADS)
    assert out.shape == (SEQ, BATCH, WIDTH)
    max_err = jnp.max(jnp.abs(out - ref))
    # bf16 matmuls + bf16 attention slab + approx reciprocal vs f32 reference.
    assert jnp.allclose(out, ref, atol=2e-2, rtol=2e-2), f"max abs err {max_err}"

    print("KERNEL_OK")
</pallas_src>

<mosaic_0001>
module attributes {stable_mosaic.version = 11 : i64} {
  func.func @resblock_stack_kernel(%arg0: i32, %arg1: i32, %arg2: memref<1x8x32xf32, #tpu.memory_space<vmem>>, %arg3: memref<8x8xf32, #tpu.memory_space<vmem>>, %arg4: memref<1x1x32xf32, #tpu.memory_space<vmem>>, %arg5: memref<1x1x32xf32, #tpu.memory_space<vmem>>, %arg6: memref<1x32x96xbf16, #tpu.memory_space<vmem>>, %arg7: memref<1x1x96xf32, #tpu.memory_space<vmem>>, %arg8: memref<1x32x32xbf16, #tpu.memory_space<vmem>>, %arg9: memref<1x1x32xf32, #tpu.memory_space<vmem>>, %arg10: memref<1x1x32xf32, #tpu.memory_space<vmem>>, %arg11: memref<1x1x32xf32, #tpu.memory_space<vmem>>, %arg12: memref<1x32x128xbf16, #tpu.memory_space<vmem>>, %arg13: memref<1x1x128xf32, #tpu.memory_space<vmem>>, %arg14: memref<1x128x32xbf16, #tpu.memory_space<vmem>>, %arg15: memref<1x1x32xf32, #tpu.memory_space<vmem>>, %arg16: memref<1x8x32xf32, #tpu.memory_space<vmem>>, %arg17: memref<1x8x32xbf16, #tpu.memory_space<vmem>>, %arg18: memref<1x8x32xf32, #tpu.memory_space<vmem>>) attributes {dimension_semantics = [#tpu.dimension_semantics<parallel>, #tpu.dimension_semantics<arbitrary>], iteration_bounds = array<i64: 2, 2>, scalar_prefetch = 0 : i64, scratch_operands = 2 : i64, tpu.core_type = #tpu.core_type<tc>, window_params = [{transform_indices = @transform_0, window_bounds = array<i64: 1, 8, 32>}, {pipeline_mode = #tpu.pipeline_mode<synchronous>, transform_indices = @transform_1, window_bounds = array<i64: 8, 8>}, {transform_indices = @transform_2, window_bounds = array<i64: 1, 1, 32>}, {transform_indices = @transform_3, window_bounds = array<i64: 1, 1, 32>}, {transform_indices = @transform_4, window_bounds = array<i64: 1, 32, 96>}, {transform_indices = @transform_5, window_bounds = array<i64: 1, 1, 96>}, {transform_indices = @transform_6, window_bounds = array<i64: 1, 32, 32>}, {transform_indices = @transform_7, window_bounds = array<i64: 1, 1, 32>}, {transform_indices = @transform_8, window_bounds = array<i64: 1, 1, 32>}, {transform_indices = @transform_9, window_bounds = array<i64: 1, 1, 32>}, {transform_indices = @transform_10, window_bounds = array<i64: 1, 32, 128>}, {transform_indices = @transform_11, window_bounds = array<i64: 1, 1, 128>}, {transform_indices = @transform_12, window_bounds = array<i64: 1, 128, 32>}, {transform_indices = @transform_13, window_bounds = array<i64: 1, 1, 32>}, {transform_indices = @transform_14, window_bounds = array<i64: 1, 8, 32>}]} {
    %c0_i32 = arith.constant 0 : i32
    %0 = arith.cmpi eq, %arg1, %c0_i32 : i32
    %1 = arith.extui %0 : i1 to i32
    %c0_i32_0 = arith.constant 0 : i32
    %2 = arith.cmpi ne, %1, %c0_i32_0 : i32
    scf.if %2 {
      %c0_86 = arith.constant 0 : index
      %c0_87 = arith.constant 0 : index
      %c0_88 = arith.constant 0 : index
      %190 = vector.load %arg2[%c0_86, %c0_87, %c0_88] : memref<1x8x32xf32, #tpu.memory_space<vmem>>, vector<1x8x32xf32>
      %c0_89 = arith.constant 0 : index
      %c0_90 = arith.constant 0 : index
      %c0_91 = arith.constant 0 : index
      %191 = vector.load %arg18[%c0_89, %c0_90, %c0_91] : memref<1x8x32xf32, #tpu.memory_space<vmem>>, vector<1x8x32xf32>
      tpu.vector_store %arg18[%c0_89, %c0_90, %c0_91], %190 {strides = array<i32>} : memref<1x8x32xf32, #tpu.memory_space<vmem>>, vector<1x8x32xf32>,
    } else {
    }
    %c0 = arith.constant 0 : index
    %c0_1 = arith.constant 0 : index
    %c0_2 = arith.constant 0 : index
    %3 = vector.load %arg18[%c0, %c0_1, %c0_2] : memref<1x8x32xf32, #tpu.memory_space<vmem>>, vector<1x8x32xf32>
    %4 = vector.shape_cast %3 : vector<1x8x32xf32> to vector<8x32xf32>
    %c0_3 = arith.constant 0 : index
    %c0_4 = arith.constant 0 : index
    %c0_5 = arith.constant 0 : index
    %5 = vector.load %arg4[%c0_3, %c0_4, %c0_5] : memref<1x1x32xf32, #tpu.memory_space<vmem>>, vector<1x1x32xf32>
    %6 = vector.shape_cast %5 : vector<1x1x32xf32> to vector<32xf32>
    %c0_6 = arith.constant 0 : index
    %c0_7 = arith.constant 0 : index
    %c0_8 = arith.constant 0 : index
    %7 = vector.load %arg5[%c0_6, %c0_7, %c0_8] : memref<1x1x32xf32, #tpu.memory_space<vmem>>, vector<1x1x32xf32>
    %8 = vector.shape_cast %7 : vector<1x1x32xf32> to vector<32xf32>
    %cst = arith.constant dense<0.000000e+00> : vector<8xf32>
    %9 = vector.multi_reduction <add>, %4, %cst [1] : vector<8x32xf32> to vector<8xf32>
    %10 = vector.shape_cast %9 : vector<8xf32> to vector<8x1xf32>
    %cst_9 = arith.constant 3.200000e+01 : f32
    %11 = vector.broadcast %cst_9 : f32 to vector<8x1xf32>
    %12 = arith.divf %10, %11 : vector<8x1xf32>
    %13 = vector.broadcast %12 : vector<8x1xf32> to vector<8x32xf32>
    %14 = arith.subf %4, %13 : vector<8x32xf32>
    %15 = arith.mulf %14, %14 : vector<8x32xf32>
    %cst_10 = arith.constant dense<0.000000e+00> : vector<8xf32>
    %16 = vector.multi_reduction <add>, %15, %cst_10 [1] : vector<8x32xf32> to vector<8xf32>
    %17 = vector.shape_cast %16 : vector<8xf32> to vector<8x1xf32>
    %cst_11 = arith.constant 3.200000e+01 : f32
    %18 = vector.broadcast %cst_11 : f32 to vector<8x1xf32>
    %19 = arith.divf %17, %18 : vector<8x1xf32>
    %20 = vector.broadcast %12 : vector<8x1xf32> to vector<8x32xf32>
    %21 = arith.subf %4, %20 : vector<8x32xf32>
    %cst_12 = arith.constant 9.99999974E-6 : f32
    %22 = vector.broadcast %cst_12 : f32 to vector<8x1xf32>
    %23 = arith.addf %19, %22 : vector<8x1xf32>
    %24 = math.rsqrt %23 : vector<8x1xf32>
    %25 = vector.broadcast %24 : vector<8x1xf32> to vector<8x32xf32>
    %26 = arith.mulf %21, %25 : vector<8x32xf32>
    %27 = vector.shape_cast %6 : vector<32xf32> to vector<1x32xf32>
    %28 = vector.broadcast %27 : vector<1x32xf32> to vector<8x32xf32>
    %29 = arith.mulf %26, %28 : vector<8x32xf32>
    %30 = vector.shape_cast %8 : vector<32xf32> to vector<1x32xf32>
    %31 = vector.broadcast %30 : vector<1x32xf32> to vector<8x32xf32>
    %32 = arith.addf %29, %31 : vector<8x32xf32>
    %33 = arith.truncf %32 : vector<8x32xf32> to vector<8x32xbf16>
    %c0_13 = arith.constant 0 : index
    %c0_14 = arith.constant 0 : index
    %c0_15 = arith.constant 0 : index
    %34 = vector.load %arg6[%c0_13, %c0_14, %c0_15] : memref<1x32x96xbf16, #tpu.memory_space<vmem>>, vector<1x32x96xbf16>
    %35 = vector.shape_cast %34 : vector<1x32x96xbf16> to vector<32x96xbf16>
    %cst_16 = arith.constant dense<0.000000e+00> : vector<8x96xf32>
    %36 = tpu.matmul %33, %35, %cst_16 {dimension_numbers = #tpu.dot_dimension_numbers<[1], [0], [0], [1], [0, 0, 1, 1], [], []>} : vector<8x32xbf16>, vector<32x96xbf16>, vector<8x96xf32> -> vector<8x96xf32>
    %c0_17 = arith.constant 0 : index
    %c0_18 = arith.constant 0 : index
    %c0_19 = arith.constant 0 : index
    %37 = vector.load %arg7[%c0_17, %c0_18, %c0_19] : memref<1x1x96xf32, #tpu.memory_space<vmem>>, vector<1x1x96xf32>
    %38 = vector.shape_cast %37 : vector<1x1x96xf32> to vector<96xf32>
    %39 = vector.shape_cast %38 : vector<96xf32> to vector<1x96xf32>
    %40 = vector.broadcast %39 : vector<1x96xf32> to vector<8x96xf32>
    %41 = arith.addf %36, %40 : vector<8x96xf32>
    %42 = vector.shape_cast %41 : vector<8x96xf32> to vector<1x8x96xf32>
    %43 = arith.truncf %42 : vector<1x8x96xf32> to vector<1x8x96xbf16>
    %44 = vector.extract_strided_slice %43 {offsets = [0, 0, 0], sizes = [1, 8, 32], strides = [1, 1, 1]} : vector<1x8x96xbf16> to vector<1x8x32xbf16>
    %45 = vector.extract_strided_slice %43 {offsets = [0, 0, 32], sizes = [1, 8, 32], strides = [1, 1, 1]} : vector<1x8x96xbf16> to vector<1x8x32xbf16>
    %46 = vector.extract_strided_slice %43 {offsets = [0, 0, 64], sizes = [1, 8, 32], strides = [1, 1, 1]} : vector<1x8x96xbf16> to vector<1x8x32xbf16>
    %47 = vector.extract_strided_slice %44 {offsets = [0, 0, 0], sizes = [1, 8, 8], strides = [1, 1, 1]} : vector<1x8x32xbf16> to vector<1x8x8xbf16>
    %48 = vector.extract_strided_slice %45 {offsets = [0, 0, 0], sizes = [1, 8, 8], strides = [1, 1, 1]} : vector<1x8x32xbf16> to vector<1x8x8xbf16>
    %49 = vector.extract_strided_slice %46 {offsets = [0, 0, 0], sizes = [1, 8, 8], strides = [1, 1, 1]} : vector<1x8x32xbf16> to vector<1x8x8xbf16>
    "tpu.trace_start"() <{level = 10 : i32, message = "bld,bmd->blm"}> : () -> ()
    %cst_20 = arith.constant dense<0.000000e+00> : vector<1x8x8xf32>
    %50 = tpu.matmul %47, %48, %cst_20 {dimension_numbers = #tpu.dot_dimension_numbers<[2], [2], [1], [1], [0, 0, 0, 1, 1, 1], [0], [0]>} : vector<1x8x8xbf16>, vector<1x8x8xbf16>, vector<1x8x8xf32> -> vector<1x8x8xf32>
    "tpu.trace_stop"() : () -> ()
    %cst_21 = arith.constant dense<0xFF800000> : vector<1x8xf32>
    %51 = vector.multi_reduction <maximumf>, %50, %cst_21 [2] : vector<1x8x8xf32> to vector<1x8xf32>
    %52 = vector.shape_cast %51 : vector<1x8xf32> to vector<1x8x1xf32>
    %53 = vector.broadcast %52 : vector<1x8x1xf32> to vector<1x8x8xf32>
    %54 = arith.subf %50, %53 : vector<1x8x8xf32>
    %55 = math.exp %54 : vector<1x8x8xf32>
    %cst_22 = arith.constant dense<0.000000e+00> : vector<1x8xf32>
    %56 = vector.multi_reduction <add>, %55, %cst_22 [2] : vector<1x8x8xf32> to vector<1x8xf32>
    %57 = vector.shape_cast %56 : vector<1x8xf32> to vector<1x8x1xf32>
    %58 = tpu.reciprocal %57 {approx = true} : vector<1x8x1xf32> -> vector<1x8x1xf32>
    %59 = vector.broadcast %58 : vector<1x8x1xf32> to vector<1x8x8xf32>
    %60 = arith.mulf %55, %59 : vector<1x8x8xf32>
    %61 = arith.truncf %60 : vector<1x8x8xf32> to vector<1x8x8xbf16>
    "tpu.trace_start"() <{level = 10 : i32, message = "blm,bmd->bld"}> : () -> ()
    %cst_23 = arith.constant dense<0.000000e+00> : vector<1x8x8xf32>
    %62 = tpu.matmul %61, %49, %cst_23 {dimension_numbers = #tpu.dot_dimension_numbers<[2], [1], [1], [2], [0, 0, 0, 1, 1, 2], [0], [0]>} : vector<1x8x8xbf16>, vector<1x8x8xbf16>, vector<1x8x8xf32> -> vector<1x8x8xf32>
    "tpu.trace_stop"() : () -> ()
    %63 = arith.truncf %62 : vector<1x8x8xf32> to vector<1x8x8xbf16>
    %c0_24 = arith.constant 0 : index
    %c0_25 = arith.constant 0 : index
    %c0_26 = arith.constant 0 : index
    %64 = vector.load %arg17[%c0_24, %c0_25, %c0_26] : memref<1x8x32xbf16, #tpu.memory_space<vmem>>, vector<1x8x8xbf16>
    tpu.vector_store %arg17[%c0_24, %c0_25, %c0_26], %63 {strides = array<i32>} : memref<1x8x32xbf16, #tpu.memory_space<vmem>>, vector<1x8x8xbf16>,
    %65 = vector.extract_strided_slice %44 {offsets = [0, 0, 8], sizes = [1, 8, 8], strides = [1, 1, 1]} : vector<1x8x32xbf16> to vector<1x8x8xbf16>
    %66 = vector.extract_strided_slice %45 {offsets = [0, 0, 8], sizes = [1, 8, 8], strides = [1, 1, 1]} : vector<1x8x32xbf16> to vector<1x8x8xbf16>
    %67 = vector.extract_strided_slice %46 {offsets = [0, 0, 8], sizes = [1, 8, 8], strides = [1, 1, 1]} : vector<1x8x32xbf16> to vector<1x8x8xbf16>
    "tpu.trace_start"() <{level = 10 : i32, message = "bld,bmd->blm"}> : () -> ()
    %cst_27 = arith.constant dense<0.000000e+00> : vector<1x8x8xf32>
    %68 = tpu.matmul %65, %66, %cst_27 {dimension_numbers = #tpu.dot_dimension_numbers<[2], [2], [1], [1], [0, 0, 0, 1, 1, 1], [0], [0]>} : vector<1x8x8xbf16>, vector<1x8x8xbf16>, vector<1x8x8xf32> -> vector<1x8x8xf32>
    "tpu.trace_stop"() : () -> ()
    %cst_28 = arith.constant dense<0xFF800000> : vector<1x8xf32>
    %69 = vector.multi_reduction <maximumf>, %68, %cst_28 [2] : vector<1x8x8xf32> to vector<1x8xf32>
    %70 = vector.shape_cast %69 : vector<1x8xf32> to vector<1x8x1xf32>
    %71 = vector.broadcast %70 : vector<1x8x1xf32> to vector<1x8x8xf32>
    %72 = arith.subf %68, %71 : vector<1x8x8xf32>
    %73 = math.exp %72 : vector<1x8x8xf32>
    %cst_29 = arith.constant dense<0.000000e+00> : vector<1x8xf32>
    %74 = vector.multi_reduction <add>, %73, %cst_29 [2] : vector<1x8x8xf32> to vector<1x8xf32>
    %75 = vector.shape_cast %74 : vector<1x8xf32> to vector<1x8x1xf32>
    %76 = tpu.reciprocal %75 {approx = true} : vector<1x8x1xf32> -> vector<1x8x1xf32>
    %77 = vector.broadcast %76 : vector<1x8x1xf32> to vector<1x8x8xf32>
    %78 = arith.mulf %73, %77 : vector<1x8x8xf32>
    %79 = arith.truncf %78 : vector<1x8x8xf32> to vector<1x8x8xbf16>
    "tpu.trace_start"() <{level = 10 : i32, message = "blm,bmd->bld"}> : () -> ()
    %cst_30 = arith.constant dense<0.000000e+00> : vector<1x8x8xf32>
    %80 = tpu.matmul %79, %67, %cst_30 {dimension_numbers = #tpu.dot_dimension_numbers<[2], [1], [1], [2], [0, 0, 0, 1, 1, 2], [0], [0]>} : vector<1x8x8xbf16>, vector<1x8x8xbf16>, vector<1x8x8xf32> -> vector<1x8x8xf32>
    "tpu.trace_stop"() : () -> ()
    %81 = arith.truncf %80 : vector<1x8x8xf32> to vector<1x8x8xbf16>
    %c0_31 = arith.constant 0 : index
    %c0_32 = arith.constant 0 : index
    %c8 = arith.constant 8 : index
    %82 = vector.load %arg17[%c0_31, %c0_32, %c8] : memref<1x8x32xbf16, #tpu.memory_space<vmem>>, vector<1x8x8xbf16>
    tpu.vector_store %arg17[%c0_31, %c0_32, %c8], %81 {strides = array<i32>} : memref<1x8x32xbf16, #tpu.memory_space<vmem>>, vector<1x8x8xbf16>,
    %83 = vector.extract_strided_slice %44 {offsets = [0, 0, 16], sizes = [1, 8, 8], strides = [1, 1, 1]} : vector<1x8x32xbf16> to vector<1x8x8xbf16>
    %84 = vector.extract_strided_slice %45 {offsets = [0, 0, 16], sizes = [1, 8, 8], strides = [1, 1, 1]} : vector<1x8x32xbf16> to vector<1x8x8xbf16>
    %85 = vector.extract_strided_slice %46 {offsets = [0, 0, 16], sizes = [1, 8, 8], strides = [1, 1, 1]} : vector<1x8x32xbf16> to vector<1x8x8xbf16>
    "tpu.trace_start"() <{level = 10 : i32, message = "bld,bmd->blm"}> : () -> ()
    %cst_33 = arith.constant dense<0.000000e+00> : vector<1x8x8xf32>
    %86 = tpu.matmul %83, %84, %cst_33 {dimension_numbers = #tpu.dot_dimension_numbers<[2], [2], [1], [1], [0, 0, 0, 1, 1, 1], [0], [0]>} : vector<1x8x8xbf16>, vector<1x8x8xbf16>, vector<1x8x8xf32> -> vector<1x8x8xf32>
    "tpu.trace_stop"() : () -> ()
    %cst_34 = arith.constant dense<0xFF800000> : vector<1x8xf32>
    %87 = vector.multi_reduction <maximumf>, %86, %cst_34 [2] : vector<1x8x8xf32> to vector<1x8xf32>
    %88 = vector.shape_cast %87 : vector<1x8xf32> to vector<1x8x1xf32>
    %89 = vector.broadcast %88 : vector<1x8x1xf32> to vector<1x8x8xf32>
    %90 = arith.subf %86, %89 : vector<1x8x8xf32>
    %91 = math.exp %90 : vector<1x8x8xf32>
    %cst_35 = arith.constant dense<0.000000e+00> : vector<1x8xf32>
    %92 = vector.multi_reduction <add>, %91, %cst_35 [2] : vector<1x8x8xf32> to vector<1x8xf32>
    %93 = vector.shape_cast %92 : vector<1x8xf32> to vector<1x8x1xf32>
    %94 = tpu.reciprocal %93 {approx = true} : vector<1x8x1xf32> -> vector<1x8x1xf32>
    %95 = vector.broadcast %94 : vector<1x8x1xf32> to vector<1x8x8xf32>
    %96 = arith.mulf %91, %95 : vector<1x8x8xf32>
    %97 = arith.truncf %96 : vector<1x8x8xf32> to vector<1x8x8xbf16>
    "tpu.trace_start"() <{level = 10 : i32, message = "blm,bmd->bld"}> : () -> ()
    %cst_36 = arith.constant dense<0.000000e+00> : vector<1x8x8xf32>
    %98 = tpu.matmul %97, %85, %cst_36 {dimension_numbers = #tpu.dot_dimension_numbers<[2], [1], [1], [2], [0, 0, 0, 1, 1, 2], [0], [0]>} : vector<1x8x8xbf16>, vector<1x8x8xbf16>, vector<1x8x8xf32> -> vector<1x8x8xf32>
    "tpu.trace_stop"() : () -> ()
    %99 = arith.truncf %98 : vector<1x8x8xf32> to vector<1x8x8xbf16>
    %c0_37 = arith.constant 0 : index
    %c0_38 = arith.constant 0 : index
    %c16 = arith.constant 16 : index
    %100 = vector.load %arg17[%c0_37, %c0_38, %c16] : memref<1x8x32xbf16, #tpu.memory_space<vmem>>, vector<1x8x8xbf16>
    tpu.vector_store %arg17[%c0_37, %c0_38, %c16], %99 {strides = array<i32>} : memref<1x8x32xbf16, #tpu.memory_space<vmem>>, vector<1x8x8xbf16>,
    %101 = vector.extract_strided_slice %44 {offsets = [0, 0, 24], sizes = [1, 8, 8], strides = [1, 1, 1]} : vector<1x8x32xbf16> to vector<1x8x8xbf16>
    %102 = vector.extract_strided_slice %45 {offsets = [0, 0, 24], sizes = [1, 8, 8], strides = [1, 1, 1]} : vector<1x8x32xbf16> to vector<1x8x8xbf16>
    %103 = vector.extract_strided_slice %46 {offsets = [0, 0, 24], sizes = [1, 8, 8], strides = [1, 1, 1]} : vector<1x8x32xbf16> to vector<1x8x8xbf16>
    "tpu.trace_start"() <{level = 10 : i32, message = "bld,bmd->blm"}> : () -> ()
    %cst_39 = arith.constant dense<0.000000e+00> : vector<1x8x8xf32>
    %104 = tpu.matmul %101, %102, %cst_39 {dimension_numbers = #tpu.dot_dimension_numbers<[2], [2], [1], [1], [0, 0, 0, 1, 1, 1], [0], [0]>} : vector<1x8x8xbf16>, vector<1x8x8xbf16>, vector<1x8x8xf32> -> vector<1x8x8xf32>
    "tpu.trace_stop"() : () -> ()
    %cst_40 = arith.constant dense<0xFF800000> : vector<1x8xf32>
    %105 = vector.multi_reduction <maximumf>, %104, %cst_40 [2] : vector<1x8x8xf32> to vector<1x8xf32>
    %106 = vector.shape_cast %105 : vector<1x8xf32> to vector<1x8x1xf32>
    %107 = vector.broadcast %106 : vector<1x8x1xf32> to vector<1x8x8xf32>
    %108 = arith.subf %104, %107 : vector<1x8x8xf32>
    %109 = math.exp %108 : vector<1x8x8xf32>
    %cst_41 = arith.constant dense<0.000000e+00> : vector<1x8xf32>
    %110 = vector.multi_reduction <add>, %109, %cst_41 [2] : vector<1x8x8xf32> to vector<1x8xf32>
    %111 = vector.shape_cast %110 : vector<1x8xf32> to vector<1x8x1xf32>
    %112 = tpu.reciprocal %111 {approx = true} : vector<1x8x1xf32> -> vector<1x8x1xf32>
    %113 = vector.broadcast %112 : vector<1x8x1xf32> to vector<1x8x8xf32>
    %114 = arith.mulf %109, %113 : vector<1x8x8xf32>
    %115 = arith.truncf %114 : vector<1x8x8xf32> to vector<1x8x8xbf16>
    "tpu.trace_start"() <{level = 10 : i32, message = "blm,bmd->bld"}> : () -> ()
    %cst_42 = arith.constant dense<0.000000e+00> : vector<1x8x8xf32>
    %116 = tpu.matmul %115, %103, %cst_42 {dimension_numbers = #tpu.dot_dimension_numbers<[2], [1], [1], [2], [0, 0, 0, 1, 1, 2], [0], [0]>} : vector<1x8x8xbf16>, vector<1x8x8xbf16>, vector<1x8x8xf32> -> vector<1x8x8xf32>
    "tpu.trace_stop"() : () -> ()
    %117 = arith.truncf %116 : vector<1x8x8xf32> to vector<1x8x8xbf16>
    %c0_43 = arith.constant 0 : index
    %c0_44 = arith.constant 0 : index
    %c24 = arith.constant 24 : index
    %118 = vector.load %arg17[%c0_43, %c0_44, %c24] : memref<1x8x32xbf16, #tpu.memory_space<vmem>>, vector<1x8x8xbf16>
    tpu.vector_store %arg17[%c0_43, %c0_44, %c24], %117 {strides = array<i32>} : memref<1x8x32xbf16, #tpu.memory_space<vmem>>, vector<1x8x8xbf16>,
    %c0_45 = arith.constant 0 : index
    %c0_46 = arith.constant 0 : index
    %c0_47 = arith.constant 0 : index
    %119 = vector.load %arg17[%c0_45, %c0_46, %c0_47] : memref<1x8x32xbf16, #tpu.memory_space<vmem>>, vector<1x8x32xbf16>
    %120 = vector.shape_cast %119 : vector<1x8x32xbf16> to vector<8x32xbf16>
    %c0_48 = arith.constant 0 : index
    %c0_49 = arith.constant 0 : index
    %c0_50 = arith.constant 0 : index
    %121 = vector.load %arg8[%c0_48, %c0_49, %c0_50] : memref<1x32x32xbf16, #tpu.memory_space<vmem>>, vector<1x32x32xbf16>
    %122 = vector.shape_cast %121 : vector<1x32x32xbf16> to vector<32x32xbf16>
    %cst_51 = arith.constant dense<0.000000e+00> : vector<8x32xf32>
    %123 = tpu.matmul %120, %122, %cst_51 {dimension_numbers = #tpu.dot_dimension_numbers<[1], [0], [0], [1], [0, 0, 1, 1], [], []>} : vector<8x32xbf16>, vector<32x32xbf16>, vector<8x32xf32> -> vector<8x32xf32>
    %124 = arith.addf %4, %123 : vector<8x32xf32>
    %c0_52 = arith.constant 0 : index
    %c0_53 = arith.constant 0 : index
    %c0_54 = arith.constant 0 : index
    %125 = vector.load %arg9[%c0_52, %c0_53, %c0_54] : memref<1x1x32xf32, #tpu.memory_space<vmem>>, vector<1x1x32xf32>
    %126 = vector.shape_cast %125 : vector<1x1x32xf32> to vector<32xf32>
    %127 = vector.shape_cast %126 : vector<32xf32> to vector<1x32xf32>
    %128 = vector.broadcast %127 : vector<1x32xf32> to vector<8x32xf32>
    %129 = arith.addf %124, %128 : vector<8x32xf32>
    %c0_55 = arith.constant 0 : index
    %c0_56 = arith.constant 0 : index
    %c0_57 = arith.constant 0 : index
    %130 = vector.load %arg10[%c0_55, %c0_56, %c0_57] : memref<1x1x32xf32, #tpu.memory_space<vmem>>, vector<1x1x32xf32>
    %131 = vector.shape_cast %130 : vector<1x1x32xf32> to vector<32xf32>
    %c0_58 = arith.constant 0 : index
    %c0_59 = arith.constant 0 : index
    %c0_60 = arith.constant 0 : index
    %132 = vector.load %arg11[%c0_58, %c0_59, %c0_60] : memref<1x1x32xf32, #tpu.memory_space<vmem>>, vector<1x1x32xf32>
    %133 = vector.shape_cast %132 : vector<1x1x32xf32> to vector<32xf32>
    %cst_61 = arith.constant dense<0.000000e+00> : vector<8xf32>
    %134 = vector.multi_reduction <add>, %129, %cst_61 [1] : vector<8x32xf32> to vector<8xf32>
    %135 = vector.shape_cast %134 : vector<8xf32> to vector<8x1xf32>
    %cst_62 = arith.constant 3.200000e+01 : f32
    %136 = vector.broadcast %cst_62 : f32 to vector<8x1xf32>
    %137 = arith.divf %135, %136 : vector<8x1xf32>
    %138 = vector.broadcast %137 : vector<8x1xf32> to vector<8x32xf32>
    %139 = arith.subf %129, %138 : vector<8x32xf32>
    %140 = arith.mulf %139, %139 : vector<8x32xf32>
    %cst_63 = arith.constant dense<0.000000e+00> : vector<8xf32>
    %141 = vector.multi_reduction <add>, %140, %cst_63 [1] : vector<8x32xf32> to vector<8xf32>
    %142 = vector.shape_cast %141 : vector<8xf32> to vector<8x1xf32>
    %cst_64 = arith.constant 3.200000e+01 : f32
    %143 = vector.broadcast %cst_64 : f32 to vector<8x1xf32>
    %144 = arith.divf %142, %143 : vector<8x1xf32>
    %145 = vector.broadcast %137 : vector<8x1xf32> to vector<8x32xf32>
    %146 = arith.subf %129, %145 : vector<8x32xf32>
    %cst_65 = arith.constant 9.99999974E-6 : f32
    %147 = vector.broadcast %cst_65 : f32 to vector<8x1xf32>
    %148 = arith.addf %144, %147 : vector<8x1xf32>
    %149 = math.rsqrt %148 : vector<8x1xf32>
    %150 = vector.broadcast %149 : vector<8x1xf32> to vector<8x32xf32>
    %151 = arith.mulf %146, %150 : vector<8x32xf32>
    %152 = vector.shape_cast %131 : vector<32xf32> to vector<1x32xf32>
    %153 = vector.broadcast %152 : vector<1x32xf32> to vector<8x32xf32>
    %154 = arith.mulf %151, %153 : vector<8x32xf32>
    %155 = vector.shape_cast %133 : vector<32xf32> to vector<1x32xf32>
    %156 = vector.broadcast %155 : vector<1x32xf32> to vector<8x32xf32>
    %157 = arith.addf %154, %156 : vector<8x32xf32>
    %158 = arith.truncf %157 : vector<8x32xf32> to vector<8x32xbf16>
    %c0_66 = arith.constant 0 : index
    %c0_67 = arith.constant 0 : index
    %c0_68 = arith.constant 0 : index
    %159 = vector.load %arg12[%c0_66, %c0_67, %c0_68] : memref<1x32x128xbf16, #tpu.memory_space<vmem>>, vector<1x32x128xbf16>
    %160 = vector.shape_cast %159 : vector<1x32x128xbf16> to vector<32x128xbf16>
    %cst_69 = arith.constant dense<0.000000e+00> : vector<8x128xf32>
    %161 = tpu.matmul %158, %160, %cst_69 {dimension_numbers = #tpu.dot_dimension_numbers<[1], [0], [0], [1], [0, 0, 1, 1], [], []>} : vector<8x32xbf16>, vector<32x128xbf16>, vector<8x128xf32> -> vector<8x128xf32>
    %c0_70 = arith.constant 0 : index
    %c0_71 = arith.constant 0 : index
    %c0_72 = arith.constant 0 : index
    %162 = vector.load %arg13[%c0_70, %c0_71, %c0_72] : memref<1x1x128xf32, #tpu.memory_space<vmem>>, vector<1x1x128xf32>
    %163 = vector.shape_cast %162 : vector<1x1x128xf32> to vector<128xf32>
    %164 = vector.shape_cast %163 : vector<128xf32> to vector<1x128xf32>
    %165 = vector.broadcast %164 : vector<1x128xf32> to vector<8x128xf32>
    %166 = arith.addf %161, %165 : vector<8x128xf32>
    %cst_73 = arith.constant 1.702000e+00 : f32
    %167 = vector.broadcast %cst_73 : f32 to vector<8x128xf32>
    %168 = arith.mulf %167, %166 : vector<8x128xf32>
    %169 = arith.negf %168 : vector<8x128xf32>
    %170 = math.exp %169 : vector<8x128xf32>
    %cst_74 = arith.constant 1.000000e+00 : f32
    %171 = vector.broadcast %cst_74 : f32 to vector<8x128xf32>
    %172 = arith.addf %171, %170 : vector<8x128xf32>
    %173 = arith.divf %171, %172 : vector<8x128xf32>
    %174 = arith.mulf %166, %173 : vector<8x128xf32>
    %175 = arith.truncf %174 : vector<8x128xf32> to vector<8x128xbf16>
    %c0_75 = arith.constant 0 : index
    %c0_76 = arith.constant 0 : index
    %c0_77 = arith.constant 0 : index
    %176 = vector.load %arg14[%c0_75, %c0_76, %c0_77] : memref<1x128x32xbf16, #tpu.memory_space<vmem>>, vector<1x128x32xbf16>
    %177 = vector.shape_cast %176 : vector<1x128x32xbf16> to vector<128x32xbf16>
    %cst_78 = arith.constant dense<0.000000e+00> : vector<8x32xf32>
    %178 = tpu.matmul %175, %177, %cst_78 {dimension_numbers = #tpu.dot_dimension_numbers<[1], [0], [0], [1], [0, 0, 1, 1], [], []>} : vector<8x128xbf16>, vector<128x32xbf16>, vector<8x32xf32> -> vector<8x32xf32>
    %c0_79 = arith.constant 0 : index
    %c0_80 = arith.constant 0 : index
    %c0_81 = arith.constant 0 : index
    %179 = vector.load %arg15[%c0_79, %c0_80, %c0_81] : memref<1x1x32xf32, #tpu.memory_space<vmem>>, vector<1x1x32xf32>
    %180 = vector.shape_cast %179 : vector<1x1x32xf32> to vector<32xf32>
    %181 = vector.shape_cast %180 : vector<32xf32> to vector<1x32xf32>
    %182 = vector.broadcast %181 : vector<1x32xf32> to vector<8x32xf32>
    %183 = arith.addf %178, %182 : vector<8x32xf32>
    %184 = arith.addf %129, %183 : vector<8x32xf32>
    %185 = vector.shape_cast %184 : vector<8x32xf32> to vector<1x8x32xf32>
    %c0_82 = arith.constant 0 : index
    %c0_83 = arith.constant 0 : index
    %c0_84 = arith.constant 0 : index
    %186 = vector.load %arg18[%c0_82, %c0_83, %c0_84] : memref<1x8x32xf32, #tpu.memory_space<vmem>>, vector<1x8x32xf32>
    tpu.vector_store %arg18[%c0_82, %c0_83, %c0_84], %185 {strides = array<i32>} : memref<1x8x32xf32, #tpu.memory_space<vmem>>, vector<1x8x32xf32>,
    %c1_i32 = arith.constant 1 : i32
    %187 = arith.cmpi eq, %arg1, %c1_i32 : i32
    %188 = arith.extui %187 : i1 to i32
    %c0_i32_85 = arith.constant 0 : i32
    %189 = arith.cmpi ne, %188, %c0_i32_85 : i32
    scf.if %189 {
      %c0_86 = arith.constant 0 : index
      %c0_87 = arith.constant 0 : index
      %c0_88 = arith.constant 0 : index
      %190 = vector.load %arg16[%c0_86, %c0_87, %c0_88] : memref<1x8x32xf32, #tpu.memory_space<vmem>>, vector<1x8x32xf32>
      tpu.vector_store %arg16[%c0_86, %c0_87, %c0_88], %185 {strides = array<i32>} : memref<1x8x32xf32, #tpu.memory_space<vmem>>, vector<1x8x32xf32>,
    } else {
    }
    return
  }
  func.func @transform_0(%arg0: i32, %arg1: i32) -> (i32, i32, i32) {
    %c0_i32 = arith.constant 0 : i32
    %c0_i32_0 = arith.constant 0 : i32
    %c0_i32_1 = arith.constant 0 : i32
    return %arg0, %c0_i32, %c0_i32_0 : i32, i32, i32
  }
  func.func @transform_1(%arg0: i32, %arg1: i32) -> (i32, i32) {
    %c0_i32 = arith.constant 0 : i32
    %c0_i32_0 = arith.constant 0 : i32
    %c0_i32_1 = arith.constant 0 : i32
    return %c0_i32, %c0_i32_0 : i32, i32
  }
  func.func @transform_2(%arg0: i32, %arg1: i32) -> (i32, i32, i32) {
    %c0_i32 = arith.constant 0 : i32
    %c0_i32_0 = arith.constant 0 : i32
    %c0_i32_1 = arith.constant 0 : i32
    return %arg1, %c0_i32, %c0_i32_0 : i32, i32, i32
  }
  func.func @transform_3(%arg0: i32, %arg1: i32) -> (i32, i32, i32) {
    %c0_i32 = arith.constant 0 : i32
    %c0_i32_0 = arith.constant 0 : i32
    %c0_i32_1 = arith.constant 0 : i32
    return %arg1, %c0_i32, %c0_i32_0 : i32, i32, i32
  }
  func.func @transform_4(%arg0: i32, %arg1: i32) -> (i32, i32, i32) {
    %c0_i32 = arith.constant 0 : i32
    %c0_i32_0 = arith.constant 0 : i32
    %c0_i32_1 = arith.constant 0 : i32
    return %arg1, %c0_i32, %c0_i32_0 : i32, i32, i32
  }
  func.func @transform_5(%arg0: i32, %arg1: i32) -> (i32, i32, i32) {
    %c0_i32 = arith.constant 0 : i32
    %c0_i32_0 = arith.constant 0 : i32
    %c0_i32_1 = arith.constant 0 : i32
    return %arg1, %c0_i32, %c0_i32_0 : i32, i32, i32
  }
  func.func @transform_6(%arg0: i32, %arg1: i32) -> (i32, i32, i32) {
    %c0_i32 = arith.constant 0 : i32
    %c0_i32_0 = arith.constant 0 : i32
    %c0_i32_1 = arith.constant 0 : i32
    return %arg1, %c0_i32, %c0_i32_0 : i32, i32, i32
  }
  func.func @transform_7(%arg0: i32, %arg1: i32) -> (i32, i32, i32) {
    %c0_i32 = arith.constant 0 : i32
    %c0_i32_0 = arith.constant 0 : i32
    %c0_i32_1 = arith.constant 0 : i32
    return %arg1, %c0_i32, %c0_i32_0 : i32, i32, i32
  }
  func.func @transform_8(%arg0: i32, %arg1: i32) -> (i32, i32, i32) {
    %c0_i32 = arith.constant 0 : i32
    %c0_i32_0 = arith.constant 0 : i32
    %c0_i32_1 = arith.constant 0 : i32
    return %arg1, %c0_i32, %c0_i32_0 : i32, i32, i32
  }
  func.func @transform_9(%arg0: i32, %arg1: i32) -> (i32, i32, i32) {
    %c0_i32 = arith.constant 0 : i32
    %c0_i32_0 = arith.constant 0 : i32
    %c0_i32_1 = arith.constant 0 : i32
    return %arg1, %c0_i32, %c0_i32_0 : i32, i32, i32
  }
  func.func @transform_10(%arg0: i32, %arg1: i32) -> (i32, i32, i32) {
    %c0_i32 = arith.constant 0 : i32
    %c0_i32_0 = arith.constant 0 : i32
    %c0_i32_1 = arith.constant 0 : i32
    return %arg1, %c0_i32, %c0_i32_0 : i32, i32, i32
  }
  func.func @transform_11(%arg0: i32, %arg1: i32) -> (i32, i32, i32) {
    %c0_i32 = arith.constant 0 : i32
    %c0_i32_0 = arith.constant 0 : i32
    %c0_i32_1 = arith.constant 0 : i32
    return %arg1, %c0_i32, %c0_i32_0 : i32, i32, i32
  }
  func.func @transform_12(%arg0: i32, %arg1: i32) -> (i32, i32, i32) {
    %c0_i32 = arith.constant 0 : i32
    %c0_i32_0 = arith.constant 0 : i32
    %c0_i32_1 = arith.constant 0 : i32
    return %arg1, %c0_i32, %c0_i32_0 : i32, i32, i32
  }
  func.func @transform_13(%arg0: i32, %arg1: i32) -> (i32, i32, i32) {
    %c0_i32 = arith.constant 0 : i32
    %c0_i32_0 = arith.constant 0 : i32
    %c0_i32_1 = arith.constant 0 : i32
    return %arg1, %c0_i32, %c0_i32_0 : i32, i32, i32
  }
  func.func @transform_14(%arg0: i32, %arg1: i32) -> (i32, i32, i32) {
    %c0_i32 = arith.constant 0 : i32
    %c0_i32_0 = arith.constant 0 : i32
    %c0_i32_1 = arith.constant 0 : i32
    return %arg0, %c0_i32, %c0_i32_0 : i32, i32, i32
  }
}

</mosaic_0001>

<bundles_post_ra>
// kernel: tpu_custom_call.1
= control target key start
LH: loop header
LB: loop body
LE: loop exit
PB: predicated region body
PF: predicated region fallthrough
CT: control target
= control target key end

     0   :  { %s2600_s0 = inlined_call_operand.vmem [shape: f32[2,8,32], index: 0, kind: input, shape index: {}]   ;;  %s2601_s1 = inlined_call_operand.vmem [shape: f32[8,8], index: 1, kind: input, shape index: {}]   ;;  %s2602_s2 = inlined_call_operand.vmem [shape: f32[2,1,32], index: 2, kind: input, shape index: {}]   ;;  %s2603_s3 = inlined_call_operand.vmem [shape: f32[2,1,32], index: 3, kind: input, shape index: {}]   ;;  %s2604_s4 = inlined_call_operand.vmem [shape: bf16[2,32,96], index: 4, kind: input, shape index: {}]   ;;  %s2605_s5 = inlined_call_operand.vmem [shape: f32[2,1,96], index: 5, kind: input, shape index: {}]   ;;  %s2606_s6 = inlined_call_operand.vmem [shape: bf16[2,32,32], index: 6, kind: input, shape index: {}]   ;;  %s2607_s7 = inlined_call_operand.vmem [shape: f32[2,1,32], index: 7, kind: input, shape index: {}]   ;;  %s2608_s8 = inlined_call_operand.vmem [shape: f32[2,1,32], index: 8, kind: input, shape index: {}]   ;;  %s2609_s9 = inlined_call_operand.vmem [shape: f32[2,1,32], index: 9, kind: input, shape index: {}]   ;;  %s2610_s10 = inlined_call_operand.vmem [shape: bf16[2,32,128], index: 10, kind: input, shape index: {}]   ;;  %s2611_s11 = inlined_call_operand.vmem [shape: f32[2,1,128], index: 11, kind: input, shape index: {}]   ;;  %s2612_s12 = inlined_call_operand.vmem [shape: bf16[2,128,32], index: 12, kind: input, shape index: {}]   ;;  %s2613_s13 = inlined_call_operand.vmem [shape: f32[2,1,32], index: 13, kind: input, shape index: {}]   ;;  %s2614_s14 = inlined_call_operand.hbm [shape: f32[2,8,32], index: 14, kind: output, shape index: {}]  }
   0x1   :  { %2630 = sst [smem:[#allocation20_spill]] %s2600_s0 }
   0x2   :  { %2631 = sst [smem:[#allocation21_spill]] %s2603_s3 }
   0x3   :  { %2632 = sst [smem:[#allocation22_spill]] %s2604_s4 }
   0x4   :  { %2633 = sst [smem:[#allocation23_spill]] %s2606_s6 }
   0x5   :  { %2634 = sst [smem:[#allocation24_spill]] %s2614_s14 }
   0x6   :  { %19 = vsyncpa [#allocation5], 0 }
   0x7   :  { %21 = vsyncpa [#allocation5 + $0x1], 0  ;;  %s2246_s28 = smov 0   ;;  %s2248_s29 = smov 0  }
   0x8   :  { %s2250_s30 = smov 0   ;;  %s2252_s15 = smov 0  }
   0x9   :  { %s2254_s1 = smov 0   ;;  %s2256_s16 = smov 0  }
   0xa   :  { %s2258_s17 = smov 0   ;;  %s2260_s18 = smov 0  }
   0xb LB: > { %2635 = sst [smem:[#allocation7_spill]] %s2124_s28  ;;  %s1742_s19 = sadd.s32 4294967295, %s2152_s18   ;;  %s2152_s18 = sphi %s2260_s18, %s27_s18   ;;  %s2148_s17 = sphi %s2258_s17, %s2677_s17   ;;  %s2144_s16 = sphi %s2256_s16, %s2676_s16   ;;  %s2140_s1 = sphi %s2254_s1, %s2675_s1   ;;  %s2136_s15 = sphi %s2252_s15, %s2674_s15   ;;  %s2132_s30 = sphi %s2250_s30, %s2673_s30   ;;  %s2128_s29 = sphi %s2248_s29, %s2672_s29   ;;  %s2124_s28 = sphi %s2246_s28, %s2671_s28  }
   0xc   : > { %2636 = sst [smem:[#allocation8_spill]] %s2128_s29  ;;  %s1743_s20 = sadd.s32 4294967294, %s2152_s18  }
   0xd   : > { %2637 = sst [smem:[#allocation9_spill]] %s2132_s30  ;;  %s36_s21 = sadd.s32 1, %s2144_s16 }
   0xe   : > { %2638 = sst [smem:[#allocation10_spill]] %s2136_s15  ;;  %p37_p0 = scmp.ge.s32.totalorder %s36_s21, 2 }
   0xf   : > { %2639 = sst [smem:[#allocation11_spill]] %s2140_s1  ;;  %s39_s22 = sadd.s32 1, %s2148_s17 }
  0x10   : > { %2640 = sst [smem:[#allocation12_spill]] %s2144_s16  ;;  %p415_p1 = scmp.ne.s32.totalorder %s2132_s30, %s2128_s29 }
  0x11   : > { %2641 = sst [smem:[#allocation13_spill]] %s2148_s17  ;;  %p416_p2 = scmp.eq.s32.totalorder %s1742_s19, 3 }
  0x12   : > { %2642 = sst [smem:[#allocation14_spill]] %s2152_s18  ;;  %s2679_s21 = smov (%p37_p0, %s36_s21), 0 }
  0x13   : > { %2643 = sst [smem:[#allocation15_spill]] %s2679_s21  ;;  %s2681_s22 = smov (!%p37_p0, %s39_s22), %s2148_s17 }
  0x14   : > { %p2295_p3 = por %p416_p2, %p415_p1  ;;  %p421_p4 = scmp.ne.s32.totalorder %s2128_s29, %s2124_s28 }
  0x15   : > { %p41_p5 = scmp.ge.s32.totalorder %s2681_s22, 2  ;;  %p422_p6 = scmp.eq.s32.totalorder %s1743_s20, 3 }
  0x16   : > { %s2644_s23 = scalar_select %p2295_p3, 1, 0 }
  0x17   : > { %p1746_p7 = scmp.ge.s32.totalorder %s2152_s18, 1  ;;  %p530_p8 = scmp.lt.s32.totalorder %s2152_s18, 5 }
  0x18   : > { %2645 = sst [smem:[#allocation16_spill]] %s2644_s23  ;;  %s2683_s22 = smov (%p41_p5, %s2681_s22), 0 }
  0x19   : > { %2646 = sst [smem:[#allocation17_spill]] %s2683_s22  ;;  %p2305_p9 = por %p422_p6, %p421_p4 }
  0x1a   : > { %p531_p10 = pnand %p1746_p7, %p530_p8  ;;  %s402_s25 = ssub.s32 %s2148_s17, %s2683_s22 }
  0x1b   : > { %s2647_s24 = scalar_select %p2305_p9, 1, 0 }
  0x1c   : > { %s405_s26 = sadd.s32 1, %s2132_s30  ;;  %p403_p11 = scmp.eq.s32.totalorder %s402_s25, 0 }
  0x1d   : > { %2648 = sst [smem:[#allocation18_spill]] %s2647_s24  ;;  %534 = sbr.rel (%p531_p10) target bundleno = 2654 (0xa5e), region = 76 }
  0x1e   : > { %s2313_s27 = scalar_select %p403_p11, %s2132_s30, %s405_s26  }
  0x1f   : > { %s2617_s19 = sand.u32 (!%p531_p10), 1, %s2128_s29   ;;  %p619_p12 = scmp.lt.s32.totalorder (!%p531_p10), %s2140_s1, 1 }
  0x20   : > { %2649 = sst [smem:[#allocation19_spill]] %s2313_s27  ;;  %s2319_s20 = sshll.u32 (!%p531_p10), %s2617_s19, 3 }
  0x21   : > { %p623_p13 = scmp.lt.s32.totalorder (!%p531_p10), %s2136_s15, 1  ;;  %s2650_s0 = sld [smem:[#allocation20_spill]] (!%p531_p10) }
  0x22   : > { %s2652_s4 = sld [smem:[#allocation22_spill]] (!%p531_p10)  ;;  %s2653_s6 = sld [smem:[#allocation23_spill]] (!%p531_p10) }
  0x23   : > { %s618_s29 = scalar_lea.vmem (!%p531_p10), [#allocation4], %s2319_s20  ;;  %s2654_s23 = sld [smem:[#allocation10_spill]] (!%p531_p10) }
  0x24   : > { %s620_s21 = scalar_select %p619_p12, %s2140_s1, 1 }
  0x25   : > { %s2324_s16 = scalar_select %p623_p13, %s2136_s15, 1 }
  0x26   : > { %s1748_s25 = sshll.u32 %s620_s21, 3 }
  0x27   : > { %s622_s19 = scalar_lea.vmem %s2650_s0, %s1748_s25  ;;  %s1800_s14 = sshll.u32 %s2324_s16, 4 }
  0x28   : > { %s2341_s1 = scalar_lea.vmem %s2652_s4, %s1800_s14  ;;  %s2350_s0 = scalar_lea.vmem %s2653_s6, %s1800_s14 }
  0x29   : > { %s650_s4 = scalar_lea.vmem %s2609_s9, %s2324_s16  ;;  %s2367_s21 = scalar_lea.vmem %s2610_s10, %s1800_s14 }
  0x2a   : > { %s658_s22 = scalar_lea.vmem %s2611_s11, %s2324_s16  ;;  %s1803_s6 = sshll.u32 %s2324_s16, 6 }
  0x2b   : > { %s666_s28 = scalar_lea.vmem %s2613_s13, %s2324_s16  ;;  %s2381_s30 = scalar_lea.vmem %s2612_s12, %s1803_s6 }
  0x2c   : > { %p1757_p0 = scmp.ne.s32.totalorder %s2654_s23, 0 }
  0x2d   : > { %v672_v0 = vld [vmem:[%s622_s19] sm:$0xff] (!%p1757_p0)  ;;  %vm673_vm0 = vcmask (!%p1757_p0), 261120  }
  0x2e   : > { %671 = sbr.rel (%p1757_p0) target bundleno = 53 (0x35), region = 80  ;;  %674 = vst.msk [vmem:[#allocation3] sm:$0xff] (!%p1757_p0), %vm673_vm0, %v672_v0 }
  0x35 PF: > { %v2385_v1 = vld [vmem:[#allocation3] sm:$0xff]  ;;  %vm678_vm1 = vcmask 261120   ;;  %v2154_v9 = vmov 0.0   ;;  %vm2155_vm2 = vmmov 0   ;;  %s2655_s14 = scalar_lea.vmem %s2602_s2, %s2324_s16  ;;  %s2656_s15 = sld [smem:[#allocation21_spill]]  ;;  %vm778_vm3 = vcmask 64512  }
  0x36   : > { %v679_v2 = vsel %vm678_vm1, %v2385_v1, 0.0  ;;  %v2020_v8 = vld [vmem:[%s2341_s1] sm:$0xff]   ;;  %1841 = vmatprep.subr.bf16.mxu0 %v2154_v9  ;;  %1845 = vmatprep.mubr.msk.bf16.mxu0 %vm2155_vm2, %v2154_v9  ;;  %v2021_v10 = vld [vmem:[%s2341_s1 + $0x8] sm:$0xff]   ;;  %s2658_s27 = scalar_lea.vmem %s2605_s5, %s2324_s16  ;;  %s2156_s18 = smov 120   ;;  %vm842_vm4 = vcmask 1043456   ;;  %vm887_vm5 = vcmask 60416  }
  0x37   : > { %680 = vadd.xlane.f32.xlu0 %v679_v2  ;;  %1842 = vmatpush3.bf16.msra.mxu0 %v2020_v8  ;;  %v1758_v15 = vld [vmem:[%s2655_s14] ss:$0 sm:$0xff]  ;;  %s2157_s24 = smov 96   ;;  %s2158_s23 = smov 88   ;;  %vm1006_vm6 = vcmask 126016   ;;  %vm1125_vm7 = vcmask 191616  }
  0x38   : > { %1861 = vmatprep.subr.bf16.mxu1 %v2154_v9  ;;  %1843 = vmatprep.subr.bf16.mxu0 %v2154_v9  ;;  %v1760_v21 = vld [vmem:[%s2658_s27] ss:$0 sm:$0xff]  ;;  %s2159_s3 = smov 80   ;;  %s2160_s6 = smov 112   ;;  %vm1244_vm8 = vcmask 257216  }
  0x39   : > { %1863 = vmatprep.mubr.msk.bf16.mxu1 %vm2155_vm2, %v2154_v9  ;;  %s2161_s14 = smov 72   ;;  %s2162_s1 = smov 104  }
  0x3a   : > { %s2163_s19 = smov 64   ;;  %s2166_s25 = smov 40  }
  0x3b   : > { %1844 = vmatpush3.bf16.msra.mxu0 %v2021_v10  ;;  %s2657_s26 = scalar_lea.vmem %s2656_s15, %s2324_s16  ;;  %s2164_s15 = smov 56  }
  0x3c   : > { %1849 = vmatprep.subr.bf16.mxu0 %v2154_v9  ;;  %v1759_v17 = vld [vmem:[%s2657_s26] ss:$0 sm:$0xff]  ;;  %s2165_s26 = smov 48   ;;  %s2167_s17 = smov 8  }
  0x3d   : > { %s2168_s27 = smov 16  }
  0xc4   : > { %v681_v3 = vpop.xlane.xlu0 %680 }
  0xc5   : > { %v683_v4 = vmul.f32 0.03125, %v681_v3 }
  0xc7   : > { %v684_v5 = vsub.f32 %v2385_v1, %v683_v4 }
  0xc9   : > { %v685_v6 = vmul.f32 %v684_v5, %v684_v5 }
  0xcb   : > { %v686_v7 = vsel %vm678_vm1, %v685_v6, 0.0 }
  0xcc   : > { %687 = vadd.xlane.f32.xlu0 %v686_v7 }
 0x159   : > { %v688_v11 = vpop.xlane.xlu0 %687 }
 0x15a   : > { %v689_v12 = vmul.f32 0.03125, %v688_v11 }
 0x15c   : > { %v690_v13 = vadd.f32 1e-05, %v689_v12 }
 0x15e   : > { %2034 = vrsqrt.f32 %v690_v13 }
 0x168   : > { %v2035_v14 = vpop.eup %2034 }
 0x169   : > { %v692_v16 = vmul.f32 %v2035_v14, %v684_v5 }
 0x16b   : > { %v699_v18 = vmul.f32 %v1758_v15, %v692_v16 }
 0x16d   : > { %v706_v19 = vadd.f32 %v1759_v17, %v699_v18 }
 0x16f   : > { %v707_v20 = vpack.c.bf16 %v706_v19, %v706_v19 }
 0x171   : > { %1846 = vmatmul.mubr.msk.bf16.vlgmr.msra.gmra.mrb[0].mxu0 %vm678_vm1, %v707_v20 }
 0x172   : > { %1851 = vmatprep.mubr.msk.bf16.mxu0 %vm2155_vm2, %v2154_v9 }
 0x244   : > { %v768_v22 = vpop.f32.mrb[0].mxu0 }
 0x245   : > { %v769_v23 = vadd.f32 %v1760_v21, %v768_v22  ;;  %v1847_v24 = vpop.f32.mrb[1].mxu0 }
 0x246   : > { %v771_v25 = vpop.f32.mrb[2].mxu0 }
 0x247   : > { %v2419_v26 = vpack.c.bf16 %v769_v23, %v769_v23  ;;  %v1848_v27 = vpop.f32.mrb[3].mxu0 }
 0x249   : > { %889 = vrot.lane.b32.xlu0 %v2419_v26, %s2156_s18  ;;  %776 = vrot.lane.b32.xlu1 %v2419_v26, %s2157_s24  ;;  %s2169_s18 = smov 24  }
 0x24d   : > { %891 = vrot.lane.b32.xlu1 %v2419_v26, %s2158_s23  ;;  %s2659_s23 = scalar_lea.vmem %s2607_s7, %s2324_s16 }
 0x251   : > { %1010 = vrot.lane.b32.xlu1 %v2419_v26, %s2159_s3 }
 0x255   : > { %1008 = vrot.lane.b32.xlu1 %v2419_v26, %s2160_s6 }
 0x259   : > { %1129 = vrot.lane.b32.xlu1 %v2419_v26, %s2161_s14  ;;  %s2660_s14 = scalar_lea.vmem %s2608_s8, %s2324_s16 }
 0x25d   : > { %1127 = vrot.lane.b32.xlu1 %v2419_v26, %s2162_s1 }
 0x2bb   : > { %v777_v28 = vpop.permute.xlu1 %776  ;;  %v890_v33 = vpop.permute.xlu0 %889 }
 0x2bc   : > { %v783_v29 = vsel %vm778_vm3, %v777_v28, 0 }
 0x2bd   : > { %1850 = vmatpush3.bf16.xpose.msra.mxu0 %v783_v29 }
 0x2be   : > { %1855 = vmatprep.subr.bf16.mxu0 %v2154_v9 }
 0x2bf   : > { %v892_v30 = vpop.permute.xlu1 %891 }
 0x2c0   : > { %v897_v31 = vsel %vm778_vm3, %v892_v30, 0 }
 0x2c1   : > { %1862 = vmatpush3.bf16.xpose.msra.mxu1 %v897_v31 }
 0x2c2   : > { %1873 = vmatprep.subr.bf16.mxu1 %v2154_v9 }
 0x2c3   : > { %v1011_v32 = vpop.permute.xlu1 %1010 }
 0x2c4   : > { %1852 = vmatmul.mubr.msk.bf16.vlgmr.msra.gmra.mrb[4].mxu0 %vm778_vm3, %v2419_v26  ;;  %v1016_v35 = vsel %vm778_vm3, %v1011_v32, 0 }
 0x2c5   : > { %1857 = vmatprep.mubr.msk.bf16.mxu0 %vm2155_vm2, %v2154_v9 }
 0x2c7   : > { %v1009_v34 = vpop.permute.xlu1 %1008 }
 0x2c8   : > { %1864 = vmatmul.mubr.msk.bf16.vlgmr.msra.gmra.mrb[0].mxu1 %vm778_vm3, %v890_v33 }
 0x2c9   : > { %1874 = vmatpush3.bf16.xpose.msra.mxu1 %v1016_v35  ;;  %1875 = vmatprep.mubr.msk.bf16.mxu1 %vm2155_vm2, %v2154_v9 }
 0x2ca   : > { %1885 = vmatprep.subr.bf16.mxu1 %v2154_v9 }
 0x2cb   : > { %v1130_v36 = vpop.permute.xlu1 %1129 }
 0x2cc   : > { %v1135_v37 = vsel %vm778_vm3, %v1130_v36, 0 }
 0x2cf   : > { %v1128_v38 = vpop.permute.xlu1 %1127 }
 0x2d0   : > { %1876 = vmatmul.mubr.msk.bf16.vlgmr.msra.gmra.mrb[4].mxu1 %vm778_vm3, %v1009_v34 }
 0x2d1   : > { %1886 = vmatpush3.bf16.xpose.msra.mxu1 %v1135_v37  ;;  %1887 = vmatprep.mubr.msk.bf16.mxu1 %vm2155_vm2, %v2154_v9 }
 0x2d2   : > { %1897 = vmatprep.subr.bf16.mxu1 %v2154_v9 }
 0x2d8   : > { %1888 = vmatmul.mubr.msk.bf16.vlgmr.msra.gmra.mrb[8].mxu1 %vm778_vm3, %v1128_v38 }
 0x2d9   : > { %1901 = vmatprep.mubr.msk.bf16.mxu1 %vm2155_vm2, %v2154_v9 }
 0x397   : > { %v819_v39 = vpop.f32.mrb[4].mxu0 }
 0x398   : > { %v1853_v40 = vpop.f32.mrb[5].mxu0  ;;  %v825_v41 = vsel %vm778_vm3, %v819_v39, -inf }
 0x399   : > { %826 = vmax.xlane.f32.xlu1 %v825_v41  ;;  %v822_v42 = vpop.f32.mrb[6].mxu0 }
 0x39a   : > { %v1854_v43 = vpop.f32.mrb[7].mxu0 }
 0x39b   : > { %v933_v44 = vpop.f32.mrb[0].mxu1 }
 0x39c   : > { %v1865_v45 = vpop.f32.mrb[1].mxu1  ;;  %v939_v46 = vsel %vm778_vm3, %v933_v44, -inf }
 0x39d   : > { %940 = vmax.xlane.f32.xlu0 %v939_v46  ;;  %v936_v47 = vpop.f32.mrb[2].mxu1 }
 0x39e   : > { %v1866_v48 = vpop.f32.mrb[3].mxu1 }
 0x3a3   : > { %v1052_v49 = vpop.f32.mrb[4].mxu1 }
 0x3a4   : > { %v1877_v50 = vpop.f32.mrb[5].mxu1  ;;  %v1058_v51 = vsel %vm778_vm3, %v1052_v49, -inf }
 0x3a5   : > { %v1055_v52 = vpop.f32.mrb[6].mxu1  ;;  %1059 = vmax.xlane.f32.xlu1 %v1058_v51  ;;  %v2022_v51 = vld [vmem:[%s2350_s0] sm:$0xff]  }
 0x3a6   : > { %v1878_v53 = vpop.f32.mrb[7].mxu1  ;;  %1898 = vmatpush3.bf16.msra.mxu1 %v2022_v51 }
 0x3a7   : > { %v2023_v53 = vld [vmem:[%s2350_s0 + $0x8] sm:$0xff]   ;;  %1899 = vmatprep.subr.bf16.mxu1 %v2154_v9 }
 0x3aa   : > { %1900 = vmatpush3.bf16.msra.mxu1 %v2023_v53 }
 0x3ab   : > { %v1171_v54 = vpop.f32.mrb[8].mxu1  ;;  %1913 = vmatprep.subr.bf16.mxu1 %v2154_v9 }
 0x3ac   : > { %v1889_v55 = vpop.f32.mrb[9].mxu1  ;;  %v1177_v56 = vsel %vm778_vm3, %v1171_v54, -inf }
 0x3ad   : > { %1178 = vmax.xlane.f32.xlu0 %v1177_v56  ;;  %v1174_v57 = vpop.f32.mrb[10].mxu1 }
 0x3ae   : > { %v1890_v58 = vpop.f32.mrb[11].mxu1 }
 0x426   : > { %v827_v59 = vpop.xlane.xlu1 %826 }
 0x427   : > { %v828_v60 = vsub.f32 %v819_v39, %v827_v59 }
 0x429   : > { %v829_v61 = vmul.f32 1.442695, %v828_v60 }
 0x42a   : > { %v941_v62 = vpop.xlane.xlu0 %940 }
 0x42b   : > { %2036 = vpow2.f32 %v829_v61  ;;  %v942_v63 = vsub.f32 %v933_v44, %v941_v62 }
 0x42d   : > { %v943_v0 = vmul.f32 1.442695, %v942_v63 }
 0x42f   : > { %2038 = vpow2.f32 %v943_v0 }
 0x432   : > { %v1060_v12 = vpop.xlane.xlu1 %1059 }
 0x433   : > { %v1061_v13 = vsub.f32 %v1052_v49, %v1060_v12 }
 0x435   : > { %v2037_v2 = vpop.eup %2036  ;;  %v1062_v14 = vmul.f32 1.442695, %v1061_v13 }
 0x436   : > { %v831_v3 = vsel %vm778_vm3, %v2037_v2, 0.0 }
 0x437   : > { %832 = vadd.xlane.f32.xlu1 %v831_v3 }
 0x439   : > { %v2039_v4 = vpop.eup %2038 }
 0x43a   : > { %v1179_v5 = vpop.xlane.xlu0 %1178  ;;  %v945_v6 = vsel %vm778_vm3, %v2039_v4, 0.0 }
 0x43b   : > { %v1180_v7 = vsub.f32 %v1171_v54, %v1179_v5  ;;  %946 = vadd.xlane.f32.xlu0 %v945_v6  ;;  %v1778_v5 = vld [vmem:[%s2659_s23] ss:$0 sm:$0xff] }
 0x43d   : > { %v1181_v8 = vmul.f32 1.442695, %v1180_v7 }
 0x43f   : > { %2040 = vpow2.f32 %v1181_v8 }
 0x440   : > { %2042 = vpow2.f32 %v1062_v14 }
 0x448   : > { %837 = vrot.lane.b32.xlu1 %v2419_v26, %s2163_s19 }
 0x449   : > { %v2041_v10 = vpop.eup %2040 }
 0x44a   : > { %v1183_v11 = vsel %vm778_vm3, %v2041_v10, 0.0  ;;  %v2043_v15 = vpop.eup %2042 }
 0x44b   : > { %1184 = vadd.xlane.f32.xlu0 %v1183_v11  ;;  %v1064_v16 = vsel %vm778_vm3, %v2043_v15, 0.0 }
 0x461   : > { %951 = vrot.lane.b32.xlu0 %v2419_v26, %s2164_s15 }
 0x46c   : > { %1065 = vadd.xlane.f32.xlu1 %v1064_v16 }
 0x47d   : > { %1070 = vrot.lane.b32.xlu1 %v2419_v26, %s2165_s26 }
 0x481   : > { %1189 = vrot.lane.b32.xlu1 %v2419_v26, %s2166_s25 }
 0x4c4   : > { %v833_v17 = vpop.xlane.xlu1 %832 }
 0x4c5   : > { %2044 = vrcp.f32 %v833_v17 }
 0x4c8   : > { %v838_v18 = vpop.permute.xlu1 %837  ;;  %v947_v20 = vpop.xlane.xlu0 %946 }
 0x4c9   : > { %v844_v19 = vsel %vm842_vm4, %v838_v18, 0  ;;  %2046 = vrcp.f32 %v947_v20  ;;  %v2025_v18 = vld [vmem:[%s2367_s21 + $0x8] sm:$0xff]  }
 0x4ca   : > { %1856 = vmatpush3.bf16.msra.mxu0 %v844_v19 }
 0x4cb   : > { %1867 = vmatprep.subr.bf16.mxu0 %v2154_v9 }
 0x4cf   : > { %v2045_v21 = vpop.eup %2044 }
 0x4d0   : > { %v835_v22 = vmul.f32 %v2045_v21, %v2037_v2 }
 0x4d2   : > { %v836_v23 = vpack.c.bf16 %v835_v22, %v835_v22 }
 0x4d3   : > { %v2047_v24 = vpop.eup %2046 }
 0x4d4   : > { %1858 = vmatmul.mubr.msk.bf16.vlgmr.msra.gmra.mrb[8].mxu0 %vm778_vm3, %v836_v23  ;;  %v949_v26 = vmul.f32 %v2047_v24, %v2039_v4  ;;  %v1779_v23 = vld [vmem:[%s2660_s14] ss:$0 sm:$0xff] }
 0x4d5   : > { %1869 = vmatprep.mubr.msk.bf16.mxu0 %vm2155_vm2, %v2154_v9 }
 0x4d6   : > { %v950_v29 = vpack.c.bf16 %v949_v26, %v949_v26 }
 0x4d8   : > { %v1185_v25 = vpop.xlane.xlu0 %1184 }
 0x4dc   : > { %v952_v27 = vpop.permute.xlu0 %951 }
 0x4dd   : > { %v957_v28 = vsel %vm842_vm4, %v952_v27, 0 }
 0x4de   : > { %1868 = vmatpush3.bf16.msra.mxu0 %v957_v28 }
 0x4df   : > { %1879 = vmatprep.subr.bf16.mxu0 %v2154_v9 }
 0x4e1   : > { %1870 = vmatmul.mubr.msk.bf16.vlgmr.msra.gmra.mrb[12].mxu0 %vm778_vm3, %v950_v29  ;;  %v2026_v29 = vld [vmem:[%s2381_s30] sm:$0xff]  }
 0x4e2   : > { %1881 = vmatprep.mubr.msk.bf16.mxu0 %vm2155_vm2, %v2154_v9 }
 0x4f9   : > { %v1066_v30 = vpop.xlane.xlu1 %1065 }
 0x4fa   : > { %2048 = vrcp.f32 %v1066_v30  ;;  %v2027_v30 = vld [vmem:[%s2381_s30 + $0x8] sm:$0xff]  }
 0x4fb   : > { %2050 = vrcp.f32 %v1185_v25  ;;  %v1780_v25 = vld [vmem:[%s650_s4] ss:$0 sm:$0xff] }
 0x4fd   : > { %v1071_v31 = vpop.permute.xlu1 %1070 }
 0x4fe   : > { %v1076_v32 = vsel %vm842_vm4, %v1071_v31, 0  ;;  %v2028_v31 = vld [vmem:[%s2381_s30 + $0x10] sm:$0xff]  }
 0x4ff   : > { %1880 = vmatpush3.bf16.msra.mxu0 %v1076_v32  ;;  %v2029_v32 = vld [vmem:[%s2381_s30 + $0x18] sm:$0xff]  }
 0x500   : > { %1891 = vmatprep.subr.bf16.mxu0 %v2154_v9 }
 0x501   : > { %v1190_v35 = vpop.permute.xlu1 %1189 }
 0x502   : > { %v1195_v38 = vsel %vm842_vm4, %v1190_v35, 0  ;;  %v2032_v35 = vld [vmem:[%s2381_s30 + $0x30] sm:$0xff]  }
 0x504   : > { %v2049_v33 = vpop.eup %2048 }
 0x505   : > { %v1068_v34 = vmul.f32 %v2049_v33, %v2043_v15  ;;  %v2051_v37 = vpop.eup %2050  ;;  %v2030_v33 = vld [vmem:[%s2381_s30 + $0x20] sm:$0xff]  }
 0x506   : > { %v1187_v39 = vmul.f32 %v2051_v37, %v2041_v10  ;;  %v1781_v37 = vld [vmem:[%s658_s22] ss:$0 sm:$0xff]  ;;  %s2661_s22 = sld [smem:[#allocation10_spill]] }
 0x507   : > { %v1069_v36 = vpack.c.bf16 %v1068_v34, %v1068_v34  ;;  %v2031_v34 = vld [vmem:[%s2381_s30 + $0x28] sm:$0xff]  }
 0x508   : > { %v1188_v40 = vpack.c.bf16 %v1187_v39, %v1187_v39 }
 0x509   : > { %1882 = vmatmul.mubr.msk.bf16.vlgmr.msra.gmra.mrb[16].mxu0 %vm778_vm3, %v1069_v36  ;;  %v2033_v36 = vld [vmem:[%s2381_s30 + $0x38] sm:$0xff]  }
 0x50a   : > { %1892 = vmatpush3.bf16.msra.mxu0 %v1195_v38  ;;  %1893 = vmatprep.mubr.msk.bf16.mxu0 %vm2155_vm2, %v2154_v9 }
 0x50b   : > { %1905 = vmatprep.subr.bf16.mxu0 %v2154_v9 }
 0x50c   : > { %p1795_p1 = scmp.ne.s32.totalorder %s2661_s22, 1 }
 0x511   : > { %1894 = vmatmul.mubr.msk.bf16.vlgmr.msra.gmra.mrb[20].mxu0 %vm778_vm3, %v1188_v40 }
 0x512   : > { %1909 = vmatprep.mubr.msk.bf16.mxu0 %vm2155_vm2, %v2154_v9 }
 0x5a7   : > { %v880_v41 = vpop.f32.mrb[8].mxu0 }
 0x5a8   : > { %v886_v42 = vpack.c.bf16 %v880_v41, %v880_v41  ;;  %v1859_v43 = vpop.f32.mrb[9].mxu0 }
 0x5a9   : > { %v883_v44 = vpop.f32.mrb[10].mxu0 }
 0x5aa   : > { %888 = vst.msk [vmem:[#allocation2] sm:$0xf] %vm887_vm5, %v886_v42  ;;  %v1860_v45 = vpop.f32.mrb[11].mxu0 }
 0x5b4   : > { %v993_v46 = vpop.f32.mrb[12].mxu0 }
 0x5b5   : > { %v1804_v47 = vpack.c.bf16 %v993_v46, %v993_v46  ;;  %v1871_v48 = vpop.f32.mrb[13].mxu0 }
 0x5b6   : > { %v996_v49 = vpop.f32.mrb[14].mxu0 }
 0x5b7   : > { %1003 = vrot.lane.b32.xlu0 %v1804_v47, %s2167_s17  ;;  %v1872_v50 = vpop.f32.mrb[15].mxu0  ;;  %v1786_v49 = vld [vmem:[%s666_s28] ss:$0 sm:$0xff] }
 0x5dc   : > { %v1112_v52 = vpop.f32.mrb[16].mxu0 }
 0x5dd   : > { %v1805_v54 = vpack.c.bf16 %v1112_v52, %v1112_v52  ;;  %v1883_v55 = vpop.f32.mrb[17].mxu0 }
 0x5de   : > { %v1115_v56 = vpop.f32.mrb[18].mxu0 }
 0x5df   : > { %1122 = vrot.lane.b32.xlu1 %v1805_v54, %s2168_s27  ;;  %v1884_v57 = vpop.f32.mrb[19].mxu0 }
 0x5e4   : > { %v1231_v58 = vpop.f32.mrb[20].mxu0 }
 0x5e5   : > { %v1806_v59 = vpack.c.bf16 %v1231_v58, %v1231_v58  ;;  %v1895_v60 = vpop.f32.mrb[21].mxu0 }
 0x5e6   : > { %v1234_v61 = vpop.f32.mrb[22].mxu0 }
 0x5e7   : > { %1241 = vrot.lane.b32.xlu0 %v1806_v59, %s2169_s18  ;;  %v1896_v62 = vpop.f32.mrb[23].mxu0 }
 0x629   : > { %v1004_v63 = vpop.permute.xlu0 %1003 }
 0x62a   : > { %1007 = vst.msk [vmem:[#allocation2] sm:$0xf] %vm1006_vm6, %v1004_v63 }
 0x651   : > { %v1123_v0 = vpop.permute.xlu1 %1122 }
 0x652   : > { %1126 = vst.msk [vmem:[#allocation2] sm:$0xf] %vm1125_vm7, %v1123_v0 }
 0x659   : > { %v1242_v2 = vpop.permute.xlu0 %1241 }
 0x65a   : > { %1245 = vst.msk [vmem:[#allocation2] sm:$0xf] %vm1244_vm8, %v1242_v2 }
 0x661   : > { %v1246_v3 = vld [vmem:[#allocation2] sm:$0xf] }
 0x662   : > { %1902 = vmatmul.mubr.msk.bf16.vlgmr.msra.gmra.mrb[12].mxu1 %vm678_vm1, %v1246_v3 }
 0x663   : > { %1929 = vmatprep.mubr.msk.bf16.mxu1 %vm2155_vm2, %v2154_v9  ;;  %1914 = vmatpush3.bf16.msra.mxu1 %v2026_v29 }
 0x664   : > { %1915 = vmatprep.subr.bf16.mxu1 %v2154_v9 }
 0x667   : > { %1916 = vmatpush3.bf16.msra.mxu1 %v2027_v30 }
 0x668   : > { %1917 = vmatprep.subr.bf16.mxu1 %v2154_v9 }
 0x66b   : > { %1918 = vmatpush3.bf16.msra.mxu1 %v2028_v31 }
 0x66c   : > { %1919 = vmatprep.subr.bf16.mxu1 %v2154_v9 }
 0x66f   : > { %1920 = vmatpush3.bf16.msra.mxu1 %v2029_v32 }
 0x670   : > { %1921 = vmatprep.subr.bf16.mxu1 %v2154_v9 }
 0x673   : > { %1922 = vmatpush3.bf16.msra.mxu1 %v2030_v33 }
 0x674   : > { %1923 = vmatprep.subr.bf16.mxu1 %v2154_v9 }
 0x677   : > { %1924 = vmatpush3.bf16.msra.mxu1 %v2031_v34 }
 0x678   : > { %1925 = vmatprep.subr.bf16.mxu1 %v2154_v9 }
 0x67b   : > { %1926 = vmatpush3.bf16.msra.mxu1 %v2032_v35 }
 0x67c   : > { %1927 = vmatprep.subr.bf16.mxu1 %v2154_v9 }
 0x67f   : > { %1928 = vmatpush3.bf16.msra.mxu1 %v2033_v36 }
 0x735   : > { %v1300_v4 = vpop.f32.mrb[12].mxu1 }
 0x736   : > { %v1306_v6 = vadd.f32 %v1300_v4, %v2385_v1  ;;  %v1903_v7 = vpop.f32.mrb[13].mxu1  ;;  %v2024_v1 = vld [vmem:[%s2367_s21] sm:$0xff]  }
 0x737   : > { %v1303_v8 = vpop.f32.mrb[14].mxu1  ;;  %1906 = vmatpush3.bf16.msra.mxu0 %v2024_v1 }
 0x738   : > { %v2494_v10 = vadd.f32 %v1778_v5, %v1306_v6  ;;  %v1904_v11 = vpop.f32.mrb[15].mxu1  ;;  %1907 = vmatprep.subr.bf16.mxu0 %v2154_v9 }
 0x73a   : > { %v1317_v12 = vsel %vm678_vm1, %v2494_v10, 0.0 }
 0x73b   : > { %1318 = vadd.xlane.f32.xlu1 %v1317_v12  ;;  %1908 = vmatpush3.bf16.msra.mxu0 %v2025_v18 }
 0x7c8   : > { %v1319_v13 = vpop.xlane.xlu1 %1318 }
 0x7c9   : > { %v1320_v14 = vmul.f32 0.03125, %v1319_v13 }
 0x7cb   : > { %v1321_v15 = vsub.f32 %v2494_v10, %v1320_v14 }
 0x7cd   : > { %v1322_v16 = vmul.f32 %v1321_v15, %v1321_v15 }
 0x7cf   : > { %v1323_v17 = vsel %vm678_vm1, %v1322_v16, 0.0 }
 0x7d0   : > { %1324 = vadd.xlane.f32.xlu0 %v1323_v17 }
 0x85d   : > { %v1325_v19 = vpop.xlane.xlu0 %1324 }
 0x85e   : > { %v1326_v20 = vmul.f32 0.03125, %v1325_v19 }
 0x860   : > { %v1327_v21 = vadd.f32 1e-05, %v1326_v20 }
 0x862   : > { %2052 = vrsqrt.f32 %v1327_v21 }
 0x86c   : > { %v2053_v22 = vpop.eup %2052 }
 0x86d   : > { %v1329_v24 = vmul.f32 %v2053_v22, %v1321_v15 }
 0x86f   : > { %v1336_v26 = vmul.f32 %v1779_v23, %v1329_v24 }
 0x871   : > { %v1343_v27 = vadd.f32 %v1780_v25, %v1336_v26 }
 0x873   : > { %v1344_v28 = vpack.c.bf16 %v1343_v27, %v1343_v27 }
 0x875   : > { %1910 = vmatmul.mubr.msk.bf16.vlgmr.msra.gmra.mrb[24].mxu0 %vm678_vm1, %v1344_v28 }
 0x948   : > { %v1405_v38 = vpop.f32.mrb[24].mxu0 }
 0x949   : > { %v1406_v39 = vadd.f32 %v1781_v37, %v1405_v38  ;;  %v1911_v40 = vpop.f32.mrb[25].mxu0 }
 0x94a   : > { %v1408_v41 = vpop.f32.mrb[26].mxu0 }
 0x94b   : > { %v1785_v42 = vmul.f32 -1.702, %v1406_v39  ;;  %v1912_v43 = vpop.f32.mrb[27].mxu0 }
 0x94d   : > { %v1413_v44 = vmul.f32 1.442695, %v1785_v42 }
 0x94f   : > { %2054 = vpow2.f32 %v1413_v44 }
 0x959   : > { %v2055_v45 = vpop.eup %2054 }
 0x95a   : > { %v1415_v46 = vadd.f32 1.0, %v2055_v45 }
 0x95c   : > { %2056 = vrcp.f32 %v1415_v46 }
 0x966   : > { %v2057_v9 = vpop.eup %2056 }
 0x967   : > { %v1418_v47 = vmul.f32 %v2057_v9, %v1406_v39 }
 0x969   : > { %v1419_v48 = vpack.c.bf16 %v1418_v47, %v1418_v47 }
 0x96b   : > { %1930 = vmatmul.mubr.bf16.vlgmr.msra.gmra.mrb[16].mxu1 %v1419_v48 }
 0xa3d   : > { %1536 = sbr.rel (%p1795_p1) target bundleno = 2628 (0xa44), region = 84 }
 0xa3e   : > { %v1525_v50 = vpop.f32.mrb[16].mxu1 }
 0xa3f   : > { %v1526_v51 = vadd.f32 %v1786_v49, %v1525_v50  ;;  %v1931_v52 = vpop.f32.mrb[17].mxu1 }
 0xa40   : > { %v1528_v53 = vpop.f32.mrb[18].mxu1 }
 0xa41   : > { %v1531_v54 = vadd.f32 %v1526_v51, %v2494_v10  ;;  %v1932_v55 = vpop.f32.mrb[19].mxu1 }
 0xa43   : > { %1532 = vst.msk [vmem:[#allocation3] sm:$0xff] %vm678_vm1, %v1531_v54  ;;  %1537 = vst.msk [vmem:[%s618_s29] sm:$0xff] (!%p1795_p1), %vm678_vm1, %v1531_v54 }
 0xa44 PF: > { %s2662_s26 = sld [smem:[#allocation11_spill]]  ;;  %s2663_s16 = sld [smem:[#allocation8_spill]] }
 0xa45   : > { %s2665_s18 = sld [smem:[#allocation24_spill]]  ;;  %s1552_s23 = sshll.u32 %s618_s29, 4  ;;  %s1553_s23 = int_to_ptr.vmem [resolvable:$true] %s1552_s23 }
 0xa46   : > { %s2058_s14 = scalar_lea.vmem %s1553_s23, 128  ;;  %s2170_s1 = smov [#allocation4]  }
 0xa47   : > { %p2059_p2 = scmp.ne.s32.totalorder %s1553_s23, %s2058_s14  ;;  %s2062_s19 = sshll.u32 %s2170_s1, 4  ;;  %s2063_s19 = int_to_ptr.vmem [resolvable:$false] %s2062_s19 }
 0xa48   : > { %s2064_s4 = scalar_lea.vmem %s2063_s19, 256  ;;  %p2065_p6 = scmp.lt.s32.totalorder %s1553_s23, %s2063_s19 }
 0xa49   : > { %p2060_p4 = pnand %p2059_p2, %p2295_p3  ;;  %p2066_p7 = scmp.lt.s32.totalorder %s2064_s4, %s2058_s14 }
 0xa4a   : > { %s1797_s25 = sshll.u32 %s2662_s26, 7  ;;  %s2667_s3 = sand.u32 1, %s2663_s16  }
 0xa4b   : > { %s2666_s0 = smov %s2665_s18  ;;  %s2549_s24 = scalar_lea.hbm %s2665_s18, %s1797_s25 }
 0xa4c   : > { %s1539_s6 = scalar_lea.sflag [#allocation5], %s2667_s3  ;;  %p2061_p5 = pneg %p2060_p4 }
 0xa4d   : > { %p2067_p8 = por %p2066_p7, %p2065_p6 }
 0xa4f   : > { %p2068_p10 = pnand %p2067_p8, %p2061_p5 }
 0xa51   : > { %2071 = shalt.err (!%p2068_p10)
}
 0xa52   : > { %s2072_s20 = scalar_lea.hbm %s2549_s24, 128  ;;  %s2076_s30 = scalar_lea.hbm %s2666_s0, 256 }
 0xa53   : > { %p2073_p11 = scmp.ne.s32.totalorder %s2549_s24, %s2072_s20  ;;  %p2077_p0 = scmp.lt.u32.totalorder %s2549_s24, %s2666_s0 }
 0xa54   : > { %p2078_p1 = scmp.lt.u32.totalorder %s2076_s30, %s2072_s20  ;;  %p2080_p4 = scmp.lt.u32.totalorder %s2072_s20, %s2549_s24 }
 0xa55   : > { %p2074_p12 = pnand %p2073_p11, %p2295_p3 }
 0xa56   : > { %p2079_p2 = por %p2078_p1, %p2077_p0 }
 0xa57   : > { %p2075_p13 = pneg %p2074_p12 }
 0xa58   : > { %p2081_p5 = por %p2080_p4, %p2079_p2 }
 0xa5a   : > { %p2082_p6 = pnand %p2081_p5, %p2075_p13 }
 0xa5c   : > { %2085 = shalt.err (!%p2082_p6)
}
 0xa5d   : > { %1933 = dma.vmem_to_hbm [thread:$0]  (%p2295_p3), %s1553_s23, 128, %s2549_s24, %s1539_s6  }
 0xa5e PF: > { %s2668_s26 = sld [smem:[#allocation14_spill]]  ;;  %s2669_s16 = sld [smem:[#allocation7_spill]] }
 0xa64   : > { %p1939_p7 = scmp.ge.s32.totalorder %s2668_s26, 2  ;;  %s1564_s17 = sand.u32 1, %s2669_s16  }
 0xa65   : > { %s1565_s27 = scalar_lea.sflag [#allocation5], %s1564_s17 }
 0xa66   : > { %p1936_p8 = pnand %p1939_p7, %p2305_p9 }
 0xa68   : > { %2119 = dma.done.wait (!%p1936_p8), %s1565_s27, 128  }
 0xa69   : > { %2121 = vsyncadd (!%p1936_p8), %s1565_s27, 4294967168  ;;  %s27_s18 = sadd.s32 1, %s2668_s26   ;;  %s2671_s28 = sld [smem:[#allocation8_spill]] }
 0xa6a   : > { %p24_p10 = scmp.ge.s32.totalorder %s27_s18, 6   ;;  %s2672_s29 = sld [smem:[#allocation9_spill]] }
 0xa6b   : > { %s2673_s30 = sld [smem:[#allocation19_spill]]  ;;  %s2674_s15 = sld [smem:[#allocation12_spill]] }
 0xa6c   : > { %s2675_s1 = sld [smem:[#allocation13_spill]]  ;;  %s2676_s16 = sld [smem:[#allocation15_spill]] }
 0xa6d   : > { %s2677_s17 = sld [smem:[#allocation17_spill]]  ;;  %26 = sbr.rel (!%p24_p10) target bundleno = 11 (0xb), region = 155 }
 0xa74   :  { %1570 = vsyncpa [#allocation5], 1 }
 0xa75   :  { %1572 = vsyncpa [#allocation5 + $0x1], 1 }

</bundles_post_ra>
